<compile_context>
chip_gen: v6e
topology: v6e:2x2x1
jax: 0.10.0
libtpu: 0.0.40
codegen_flags: <defaults>
</compile_context>

<pallas_src>
import jax
import jax.numpy as jnp
from jax.experimental import pallas as pl
from jax.experimental.pallas import tpu as pltpu

EPS = 1e-5


def _adapter_kernel(x_ref, b1w_ref, g1_ref, b1_ref, b2w_ref, g2_ref, b2_ref,
                    sel_ref, selt_ref, o_ref):
    N, H, WCin = x_ref.shape
    WCout = o_ref.shape[2]
    Cout = sel_ref.shape[1]
    W = WCout // Cout
    P = N * H * W

    sel = sel_ref[...]      # (W*Cout, Cout)  fold lane groups -> per-channel
    selt = selt_ref[...]    # (Cout, W*Cout)  broadcast per-channel -> lanes

    def conv3x3(pad_ref, bw_ref):
        # 3 MXU matmuls (one per vertical tap); horizontal taps + channel
        # mixing live inside the banded bf16 weights, f32 accumulation, and
        # the result is already lane-dense (N*H, W*Cout).
        # TODO(synk): on v6e/v7x, concatenate the 3 bands along K (one matmul
        # of K=3*W*C) once W*C is a multiple of 128, to fill the 256-deep MXU.
        wc = pad_ref.shape[2]
        acc = None
        for dy in range(3):
            lhs = pad_ref[:, dy:dy + H, :].reshape(N * H, wc)
            part = jnp.dot(lhs, bw_ref[dy],
                           preferred_element_type=jnp.float32)
            acc = part if acc is None else acc + part
        return acc                                           # (N*H, W*Cout) f32

    def bn_relu(acc, g, b):
        # Training-mode BatchNorm2d (batch stats, biased var) + ReLU, fully in
        # the lane-dense layout.  Channel folds / broadcasts go through the
        # MXU (sel / selT), not tile/reshape.
        csum = jnp.sum(acc, axis=0, keepdims=True)                     # (1, WC)
        mean_c = jnp.dot(csum, sel, preferred_element_type=jnp.float32) / P
        cen = acc - jnp.dot(mean_c, selt, preferred_element_type=jnp.float32)
        vsum = jnp.sum(cen * cen, axis=0, keepdims=True)
        var_c = jnp.dot(vsum, sel, preferred_element_type=jnp.float32) / P
        scale_c = g * jax.lax.rsqrt(var_c + EPS)                       # (1, Cout)
        y = (cen * jnp.dot(scale_c, selt, preferred_element_type=jnp.float32)
             + jnp.dot(b, selt, preferred_element_type=jnp.float32))
        return jnp.maximum(y, 0.0)                                     # (N*H, WC)

    def stage1(xpad_ref):
        # Only the top/bottom 1-row halo is zeroed; interior store is
        # full-width and lane-aligned.
        xpad_ref[:, 0:1, :] = jnp.zeros((N, 1, WCin), xpad_ref.dtype)
        xpad_ref[:, H + 1:H + 2, :] = jnp.zeros((N, 1, WCin), xpad_ref.dtype)
        xpad_ref[:, 1:H + 1, :] = x_ref[...]
        y1 = bn_relu(conv3x3(xpad_ref, b1w_ref), g1_ref[...], b1_ref[...])
        # Stage y1 through the output buffer so the two padded scratches can
        # live in sequential (offset-sharing) run_scoped regions.
        o_ref[...] = y1.reshape(N, H, WCout)

    def stage2(ypad_ref):
        ypad_ref[:, 0:1, :] = jnp.zeros((N, 1, WCout), ypad_ref.dtype)
        ypad_ref[:, H + 1:H + 2, :] = jnp.zeros((N, 1, WCout), ypad_ref.dtype)
        ypad_ref[:, 1:H + 1, :] = o_ref[...].astype(ypad_ref.dtype)
        y2 = bn_relu(conv3x3(ypad_ref, b2w_ref), g2_ref[...], b2_ref[...])
        y2n = y2.reshape(N, H, WCout)
        # AdaptiveAvgPool2d(1) context, added back (lane-dense store).
        gctx = jnp.dot(jnp.sum(y2n, axis=1), sel,
                       preferred_element_type=jnp.float32) / (H * W)   # (N, Cout)
        gctx_t = jnp.dot(gctx, selt, preferred_element_type=jnp.float32)
        o_ref[...] = y2n + gctx_t[:, None, :]

    # Sequential scopes: peak scratch = max(xpad, ypad), not the sum.
    pl.run_scoped(stage1, pltpu.VMEM((N, H + 2, WCin), jnp.bfloat16))
    pl.run_scoped(stage2, pltpu.VMEM((N, H + 2, WCout), jnp.bfloat16))


def _band_weights(w, c_in, c_out, width, dtype=jnp.bfloat16):
    """Fold horizontal taps + channel mixing (incl. the left/right zero halo)
    of a 3x3 conv into banded matrices acting on channels-packed rows.

    w: (9, c_in, c_out) tap-major weights (tap k = dy*3 + dx).
    Returns (3, width*c_in, width*c_out), one matrix per vertical tap dy:
      B[dy, p*c_in + ci, j*c_out + co] = w[dy*3 + (p-j+1), ci, co] if |p-j|<=1.
    Out-of-image horizontal taps are implicitly zero (p only ranges over the
    image), so no data-side left/right padding is needed.
    """
    w4 = w.astype(jnp.float32).reshape(3, 3, c_in, c_out)
    p = jnp.arange(width)[:, None]
    j = jnp.arange(width)[None, :]
    dx = p - j + 1                                    # (width, width)
    valid = (dx >= 0) & (dx <= 2)
    dx_c = jnp.clip(dx, 0, 2)
    bands = []
    for dy in range(3):
        taps = w4[dy][dx_c]                           # (width, width, ci, co)
        taps = jnp.where(valid[:, :, None, None], taps, 0.0)
        bands.append(taps.transpose(0, 2, 1, 3).reshape(width * c_in,
                                                        width * c_out))
    return jnp.stack(bands, axis=0).astype(dtype)


def spatial_context_adapter(x_nchw, params):
    """x_nchw: (N, Cin, H, W) float32 -> (N, Cout, H, W) float32."""
    x = jnp.transpose(x_nchw, (0, 2, 3, 1)).astype(jnp.float32)  # NCHW -> NHWC
    N, H, W, Cin = x.shape
    Cout = params["w1"].shape[-1]
    # Channels-packed, bf16 for the MXU / halved DMA traffic.
    x_packed = x.reshape(N, H, W * Cin).astype(jnp.bfloat16)

    b1w = _band_weights(params["w1"], Cin, Cout, W)    # (3, W*Cin,  W*Cout) bf16
    b2w = _band_weights(params["w2"], Cout, Cout, W)   # (3, W*Cout, W*Cout) bf16

    # selT[c, j*Cout + c'] = (c == c'); sel is its transpose.  Built once here
    # (not per grid step inside the kernel) and kept VMEM resident.
    selt = jnp.tile(jnp.eye(Cout, dtype=jnp.float32), (1, W))     # (Cout, W*Cout)
    sel = selt.T                                                  # (W*Cout, Cout)

    flops = (2 * N * H * W * Cout * 3 * (W * Cin)
             + 2 * N * H * W * Cout * 3 * (W * Cout)
             + 20 * N * H * W * Cout)
    bytes_accessed = (2 * (x_packed.size + b1w.size + b2w.size)
                      + 4 * (sel.size + selt.size + 4 * Cout
                             + N * H * W * Cout))

    out_packed = pl.pallas_call(
        _adapter_kernel,
        out_shape=jax.ShapeDtypeStruct((N, H, W * Cout), jnp.float32),
        in_specs=[pl.BlockSpec(memory_space=pltpu.MemorySpace.VMEM)] * 9,
        out_specs=pl.BlockSpec(memory_space=pltpu.MemorySpace.VMEM),
        cost_estimate=pl.CostEstimate(flops=flops, transcendentals=2 * Cout,
                                      bytes_accessed=bytes_accessed),
        # TODO(synk): re-derive vmem_limit_bytes per generation once gridded
        # (raise toward ~96 MiB on v5e/v6e, keep <=48 MiB working set on v7x).
        compiler_params=pltpu.CompilerParams(
            vmem_limit_bytes=32 * 1024 * 1024),
    )(x_packed, b1w, params["g1"], params["b1"],
      b2w, params["g2"], params["b2"], sel, selt)

    out = out_packed.reshape(N, H, W, Cout)
    return jnp.transpose(out, (0, 3, 1, 2))                        # NHWC -> NCHW


def reference(x_nchw, params, matmul_dtype=jnp.float32):
    """Pure-JAX reference mirroring the PyTorch forward (training-mode BN).

    With matmul_dtype=bfloat16 the conv operands are quantized exactly like
    the kernel's (bf16 operands, f32 accumulation), so that comparison tests
    the kernel structure independently of the declared precision policy.
    """
    x = jnp.transpose(x_nchw, (0, 2, 3, 1)).astype(jnp.float32)

    def conv(inp, w):  # w: (9, Ci, Co) -> HWIO
        k = w.reshape(3, 3, w.shape[1], w.shape[2]).astype(matmul_dtype)
        return jax.lax.conv_general_dilated(
            inp.astype(matmul_dtype), k, (1, 1), "SAME",
            dimension_numbers=("NHWC", "HWIO", "NHWC"),
            preferred_element_type=jnp.float32)

    def bn_relu(y, g, b):
        mean = y.mean(axis=(0, 1, 2))
        var = ((y - mean) ** 2).mean(axis=(0, 1, 2))
        z = (y - mean) * jax.lax.rsqrt(var + EPS) * g.reshape(-1) + b.reshape(-1)
        return jnp.maximum(z, 0.0)

    y = bn_relu(conv(x, params["w1"]), params["g1"], params["b1"])
    y = bn_relu(conv(y, params["w2"]), params["g2"], params["b2"])
    out = y + y.mean(axis=(1, 2), keepdims=True)
    return jnp.transpose(out, (0, 3, 1, 2))


if __name__ == "__main__":
    key = jax.random.PRNGKey(0)
    kx, k1, k2, k3, k4, k5, k6 = jax.random.split(key, 7)

    N, Cin, Cout, H, W = 2, 4, 8, 16, 16
    x = jax.random.normal(kx, (N, Cin, H, W), jnp.float32)

    # Deterministic synthetic parameters (conv weights stored as (9, Ci, Co)).
    params = {
        "w1": 0.1 * jax.random.normal(k1, (9, Cin, Cout), jnp.float32),
        "g1": 1.0 + 0.1 * jax.random.normal(k2, (1, Cout), jnp.float32),
        "b1": 0.1 * jax.random.normal(k3, (1, Cout), jnp.float32),
        "w2": 0.1 * jax.random.normal(k4, (9, Cout, Cout), jnp.float32),
        "g2": 1.0 + 0.1 * jax.random.normal(k5, (1, Cout), jnp.float32),
        "b2": 0.1 * jax.random.normal(k6, (1, Cout), jnp.float32),
    }

    out = jax.block_until_ready(spatial_context_adapter(x, params))
    assert out.shape == (N, Cout, H, W), out.shape

    # Strict check vs. a bf16-operand-matched reference (tests the kernel
    # structure: banded convs, BN batch stats, global-pool context).
    ref_bf16 = jax.block_until_ready(
        reference(x, params, matmul_dtype=jnp.bfloat16))
    err_strict = float(jnp.max(jnp.abs(out - ref_bf16)))

    # Loose sanity check vs. the pure-f32 reference (bounds the bf16-operand
    # quantization error of the declared precision policy).
    ref_f32 = jax.block_until_ready(
        reference(x, params, matmul_dtype=jnp.float32))
    err_f32 = float(jnp.max(jnp.abs(out - ref_f32)))

    if err_strict < 2e-3 and err_f32 < 5e-2:
        print("KERNEL_OK")
    else:
        raise SystemExit(
            f"mismatch: bf16-matched err = {err_strict}, f32 err = {err_f32}")
</pallas_src>

<mosaic_0001>
module attributes {stable_mosaic.version = 11 : i64} {
  func.func @_adapter_kernel(%arg0: memref<2x16x64xbf16, #tpu.memory_space<vmem>>, %arg1: memref<3x64x128xbf16, #tpu.memory_space<vmem>>, %arg2: memref<1x8xf32, #tpu.memory_space<vmem>>, %arg3: memref<1x8xf32, #tpu.memory_space<vmem>>, %arg4: memref<3x128x128xbf16, #tpu.memory_space<vmem>>, %arg5: memref<1x8xf32, #tpu.memory_space<vmem>>, %arg6: memref<1x8xf32, #tpu.memory_space<vmem>>, %arg7: memref<128x8xf32, #tpu.memory_space<vmem>>, %arg8: memref<8x128xf32, #tpu.memory_space<vmem>>, %arg9: memref<2x16x128xf32, #tpu.memory_space<vmem>>) attributes {dimension_semantics = [], scalar_prefetch = 0 : i64, scratch_operands = 0 : i64, tpu.core_type = #tpu.core_type<tc>} {
    %c0 = arith.constant 0 : index
    %c0_0 = arith.constant 0 : index
    %0 = vector.load %arg7[%c0, %c0_0] : memref<128x8xf32, #tpu.memory_space<vmem>>, vector<128x8xf32>
    %c0_1 = arith.constant 0 : index
    %c0_2 = arith.constant 0 : index
    %1 = vector.load %arg8[%c0_1, %c0_2] : memref<8x128xf32, #tpu.memory_space<vmem>>, vector<8x128xf32>
    "tpu.region"() ({
      %alloca = memref.alloca() : memref<2x18x64xbf16, #tpu.memory_space<vmem>>
      %cst = arith.constant 0.000000e+00 : bf16
      %2 = vector.broadcast %cst : bf16 to vector<2x1x64xbf16>
      %c0_3 = arith.constant 0 : index
      %c0_4 = arith.constant 0 : index
      %c0_5 = arith.constant 0 : index
      %3 = vector.load %alloca[%c0_3, %c0_4, %c0_5] : memref<2x18x64xbf16, #tpu.memory_space<vmem>>, vector<2x1x64xbf16>
      tpu.vector_store %alloca[%c0_3, %c0_4, %c0_5], %2 {strides = array<i32>} : memref<2x18x64xbf16, #tpu.memory_space<vmem>>, vector<2x1x64xbf16>,
      %cst_6 = arith.constant 0.000000e+00 : bf16
      %4 = vector.broadcast %cst_6 : bf16 to vector<2x1x64xbf16>
      %c0_7 = arith.constant 0 : index
      %c17 = arith.constant 17 : index
      %c0_8 = arith.constant 0 : index
      %5 = vector.load %alloca[%c0_7, %c17, %c0_8] : memref<2x18x64xbf16, #tpu.memory_space<vmem>>, vector<2x1x64xbf16>
      tpu.vector_store %alloca[%c0_7, %c17, %c0_8], %4 {strides = array<i32>} : memref<2x18x64xbf16, #tpu.memory_space<vmem>>, vector<2x1x64xbf16>,
      %c0_9 = arith.constant 0 : index
      %c0_10 = arith.constant 0 : index
      %c0_11 = arith.constant 0 : index
      %6 = vector.load %arg0[%c0_9, %c0_10, %c0_11] : memref<2x16x64xbf16, #tpu.memory_space<vmem>>, vector<2x16x64xbf16>
      %c0_12 = arith.constant 0 : index
      %c1 = arith.constant 1 : index
      %c0_13 = arith.constant 0 : index
      %7 = vector.load %alloca[%c0_12, %c1, %c0_13] : memref<2x18x64xbf16, #tpu.memory_space<vmem>>, vector<2x16x64xbf16>
      tpu.vector_store %alloca[%c0_12, %c1, %c0_13], %6 {strides = array<i32>} : memref<2x18x64xbf16, #tpu.memory_space<vmem>>, vector<2x16x64xbf16>,
      %c0_14 = arith.constant 0 : index
      %c0_15 = arith.constant 0 : index
      %c0_16 = arith.constant 0 : index
      %8 = vector.load %alloca[%c0_14, %c0_15, %c0_16] : memref<2x18x64xbf16, #tpu.memory_space<vmem>>, vector<2x16x64xbf16>
      %9 = vector.shape_cast %8 : vector<2x16x64xbf16> to vector<32x64xbf16>
      %c0_17 = arith.constant 0 : index
      %c0_18 = arith.constant 0 : index
      %c0_19 = arith.constant 0 : index
      %10 = vector.load %arg1[%c0_17, %c0_18, %c0_19] : memref<3x64x128xbf16, #tpu.memory_space<vmem>>, vector<1x64x128xbf16>
      %11 = vector.shape_cast %10 : vector<1x64x128xbf16> to vector<64x128xbf16>
      %cst_20 = arith.constant dense<0.000000e+00> : vector<32x128xf32>
      %12 = tpu.matmul %9, %11, %cst_20 {dimension_numbers = #tpu.dot_dimension_numbers<[1], [0], [0], [1], [0, 0, 1, 1], [], []>} : vector<32x64xbf16>, vector<64x128xbf16>, vector<32x128xf32> -> vector<32x128xf32>
      %c0_21 = arith.constant 0 : index
      %c1_22 = arith.constant 1 : index
      %c0_23 = arith.constant 0 : index
      %13 = vector.load %alloca[%c0_21, %c1_22, %c0_23] : memref<2x18x64xbf16, #tpu.memory_space<vmem>>, vector<2x16x64xbf16>
      %14 = vector.shape_cast %13 : vector<2x16x64xbf16> to vector<32x64xbf16>
      %c1_24 = arith.constant 1 : index
      %c0_25 = arith.constant 0 : index
      %c0_26 = arith.constant 0 : index
      %15 = vector.load %arg1[%c1_24, %c0_25, %c0_26] : memref<3x64x128xbf16, #tpu.memory_space<vmem>>, vector<1x64x128xbf16>
      %16 = vector.shape_cast %15 : vector<1x64x128xbf16> to vector<64x128xbf16>
      %cst_27 = arith.constant dense<0.000000e+00> : vector<32x128xf32>
      %17 = tpu.matmul %14, %16, %cst_27 {dimension_numbers = #tpu.dot_dimension_numbers<[1], [0], [0], [1], [0, 0, 1, 1], [], []>} : vector<32x64xbf16>, vector<64x128xbf16>, vector<32x128xf32> -> vector<32x128xf32>
      %18 = arith.addf %12, %17 : vector<32x128xf32>
      %c0_28 = arith.constant 0 : index
      %c2 = arith.constant 2 : index
      %c0_29 = arith.constant 0 : index
      %19 = vector.load %alloca[%c0_28, %c2, %c0_29] : memref<2x18x64xbf16, #tpu.memory_space<vmem>>, vector<2x16x64xbf16>
      %20 = vector.shape_cast %19 : vector<2x16x64xbf16> to vector<32x64xbf16>
      %c2_30 = arith.constant 2 : index
      %c0_31 = arith.constant 0 : index
      %c0_32 = arith.constant 0 : index
      %21 = vector.load %arg1[%c2_30, %c0_31, %c0_32] : memref<3x64x128xbf16, #tpu.memory_space<vmem>>, vector<1x64x128xbf16>
      %22 = vector.shape_cast %21 : vector<1x64x128xbf16> to vector<64x128xbf16>
      %cst_33 = arith.constant dense<0.000000e+00> : vector<32x128xf32>
      %23 = tpu.matmul %20, %22, %cst_33 {dimension_numbers = #tpu.dot_dimension_numbers<[1], [0], [0], [1], [0, 0, 1, 1], [], []>} : vector<32x64xbf16>, vector<64x128xbf16>, vector<32x128xf32> -> vector<32x128xf32>
      %24 = arith.addf %18, %23 : vector<32x128xf32>
      %c0_34 = arith.constant 0 : index
      %c0_35 = arith.constant 0 : index
      %25 = vector.load %arg2[%c0_34, %c0_35] : memref<1x8xf32, #tpu.memory_space<vmem>>, vector<1x8xf32>
      %c0_36 = arith.constant 0 : index
      %c0_37 = arith.constant 0 : index
      %26 = vector.load %arg3[%c0_36, %c0_37] : memref<1x8xf32, #tpu.memory_space<vmem>>, vector<1x8xf32>
      %cst_38 = arith.constant dense<0.000000e+00> : vector<128xf32>
      %27 = vector.multi_reduction <add>, %24, %cst_38 [0] : vector<32x128xf32> to vector<128xf32>
      %28 = vector.shape_cast %27 : vector<128xf32> to vector<1x128xf32>
      %cst_39 = arith.constant dense<0.000000e+00> : vector<1x8xf32>
      %29 = tpu.matmul %28, %0, %cst_39 {dimension_numbers = #tpu.dot_dimension_numbers<[1], [0], [0], [1], [0, 0, 1, 1], [], []>} : vector<1x128xf32>, vector<128x8xf32>, vector<1x8xf32> -> vector<1x8xf32>
      %cst_40 = arith.constant 5.120000e+02 : f32
      %30 = vector.broadcast %cst_40 : f32 to vector<1x8xf32>
      %31 = arith.divf %29, %30 : vector<1x8xf32>
      %cst_41 = arith.constant dense<0.000000e+00> : vector<1x128xf32>
      %32 = tpu.matmul %31, %1, %cst_41 {dimension_numbers = #tpu.dot_dimension_numbers<[1], [0], [0], [1], [0, 0, 1, 1], [], []>} : vector<1x8xf32>, vector<8x128xf32>, vector<1x128xf32> -> vector<1x128xf32>
      %33 = vector.broadcast %32 : vector<1x128xf32> to vector<32x128xf32>
      %34 = arith.subf %24, %33 : vector<32x128xf32>
      %35 = arith.mulf %34, %34 : vector<32x128xf32>
      %cst_42 = arith.constant dense<0.000000e+00> : vector<128xf32>
      %36 = vector.multi_reduction <add>, %35, %cst_42 [0] : vector<32x128xf32> to vector<128xf32>
      %37 = vector.shape_cast %36 : vector<128xf32> to vector<1x128xf32>
      %cst_43 = arith.constant dense<0.000000e+00> : vector<1x8xf32>
      %38 = tpu.matmul %37, %0, %cst_43 {dimension_numbers = #tpu.dot_dimension_numbers<[1], [0], [0], [1], [0, 0, 1, 1], [], []>} : vector<1x128xf32>, vector<128x8xf32>, vector<1x8xf32> -> vector<1x8xf32>
      %cst_44 = arith.constant 5.120000e+02 : f32
      %39 = vector.broadcast %cst_44 : f32 to vector<1x8xf32>
      %40 = arith.divf %38, %39 : vector<1x8xf32>
      %cst_45 = arith.constant 9.99999974E-6 : f32
      %41 = vector.broadcast %cst_45 : f32 to vector<1x8xf32>
      %42 = arith.addf %40, %41 : vector<1x8xf32>
      %43 = math.rsqrt %42 : vector<1x8xf32>
      %44 = arith.mulf %25, %43 : vector<1x8xf32>
      %cst_46 = arith.constant dense<0.000000e+00> : vector<1x128xf32>
      %45 = tpu.matmul %44, %1, %cst_46 {dimension_numbers = #tpu.dot_dimension_numbers<[1], [0], [0], [1], [0, 0, 1, 1], [], []>} : vector<1x8xf32>, vector<8x128xf32>, vector<1x128xf32> -> vector<1x128xf32>
      %46 = vector.broadcast %45 : vector<1x128xf32> to vector<32x128xf32>
      %47 = arith.mulf %34, %46 : vector<32x128xf32>
      %cst_47 = arith.constant dense<0.000000e+00> : vector<1x128xf32>
      %48 = tpu.matmul %26, %1, %cst_47 {dimension_numbers = #tpu.dot_dimension_numbers<[1], [0], [0], [1], [0, 0, 1, 1], [], []>} : vector<1x8xf32>, vector<8x128xf32>, vector<1x128xf32> -> vector<1x128xf32>
      %49 = vector.broadcast %48 : vector<1x128xf32> to vector<32x128xf32>
      %50 = arith.addf %47, %49 : vector<32x128xf32>
      %cst_48 = arith.constant 0.000000e+00 : f32
      %51 = vector.broadcast %cst_48 : f32 to vector<32x128xf32>
      %52 = arith.maximumf %50, %51 : vector<32x128xf32>
      %53 = vector.shape_cast %52 : vector<32x128xf32> to vector<2x16x128xf32>
      %c0_49 = arith.constant 0 : index
      %c0_50 = arith.constant 0 : index
      %c0_51 = arith.constant 0 : index
      %54 = vector.load %arg9[%c0_49, %c0_50, %c0_51] : memref<2x16x128xf32, #tpu.memory_space<vmem>>, vector<2x16x128xf32>
      tpu.vector_store %arg9[%c0_49, %c0_50, %c0_51], %53 {strides = array<i32>} : memref<2x16x128xf32, #tpu.memory_space<vmem>>, vector<2x16x128xf32>,
      tpu.yield
    }) : () -> ()
    "tpu.region"() ({
      %alloca = memref.alloca() : memref<2x18x128xbf16, #tpu.memory_space<vmem>>
      %cst = arith.constant 0.000000e+00 : bf16
      %2 = vector.broadcast %cst : bf16 to vector<2x1x128xbf16>
      %c0_3 = arith.constant 0 : index
      %c0_4 = arith.constant 0 : index
      %c0_5 = arith.constant 0 : index
      %3 = vector.load %alloca[%c0_3, %c0_4, %c0_5] : memref<2x18x128xbf16, #tpu.memory_space<vmem>>, vector<2x1x128xbf16>
      tpu.vector_store %alloca[%c0_3, %c0_4, %c0_5], %2 {strides = array<i32>} : memref<2x18x128xbf16, #tpu.memory_space<vmem>>, vector<2x1x128xbf16>,
      %cst_6 = arith.constant 0.000000e+00 : bf16
      %4 = vector.broadcast %cst_6 : bf16 to vector<2x1x128xbf16>
      %c0_7 = arith.constant 0 : index
      %c17 = arith.constant 17 : index
      %c0_8 = arith.constant 0 : index
      %5 = vector.load %alloca[%c0_7, %c17, %c0_8] : memref<2x18x128xbf16, #tpu.memory_space<vmem>>, vector<2x1x128xbf16>
      tpu.vector_store %alloca[%c0_7, %c17, %c0_8], %4 {strides = array<i32>} : memref<2x18x128xbf16, #tpu.memory_space<vmem>>, vector<2x1x128xbf16>,
      %c0_9 = arith.constant 0 : index
      %c0_10 = arith.constant 0 : index
      %c0_11 = arith.constant 0 : index
      %6 = vector.load %arg9[%c0_9, %c0_10, %c0_11] : memref<2x16x128xf32, #tpu.memory_space<vmem>>, vector<2x16x128xf32>
      %7 = arith.truncf %6 : vector<2x16x128xf32> to vector<2x16x128xbf16>
      %c0_12 = arith.constant 0 : index
      %c1 = arith.constant 1 : index
      %c0_13 = arith.constant 0 : index
      %8 = vector.load %alloca[%c0_12, %c1, %c0_13] : memref<2x18x128xbf16, #tpu.memory_space<vmem>>, vector<2x16x128xbf16>
      tpu.vector_store %alloca[%c0_12, %c1, %c0_13], %7 {strides = array<i32>} : memref<2x18x128xbf16, #tpu.memory_space<vmem>>, vector<2x16x128xbf16>,
      %c0_14 = arith.constant 0 : index
      %c0_15 = arith.constant 0 : index
      %c0_16 = arith.constant 0 : index
      %9 = vector.load %alloca[%c0_14, %c0_15, %c0_16] : memref<2x18x128xbf16, #tpu.memory_space<vmem>>, vector<2x16x128xbf16>
      %10 = vector.shape_cast %9 : vector<2x16x128xbf16> to vector<32x128xbf16>
      %c0_17 = arith.constant 0 : index
      %c0_18 = arith.constant 0 : index
      %c0_19 = arith.constant 0 : index
      %11 = vector.load %arg4[%c0_17, %c0_18, %c0_19] : memref<3x128x128xbf16, #tpu.memory_space<vmem>>, vector<1x128x128xbf16>
      %12 = vector.shape_cast %11 : vector<1x128x128xbf16> to vector<128x128xbf16>
      %cst_20 = arith.constant dense<0.000000e+00> : vector<32x128xf32>
      %13 = tpu.matmul %10, %12, %cst_20 {dimension_numbers = #tpu.dot_dimension_numbers<[1], [0], [0], [1], [0, 0, 1, 1], [], []>} : vector<32x128xbf16>, vector<128x128xbf16>, vector<32x128xf32> -> vector<32x128xf32>
      %c0_21 = arith.constant 0 : index
      %c1_22 = arith.constant 1 : index
      %c0_23 = arith.constant 0 : index
      %14 = vector.load %alloca[%c0_21, %c1_22, %c0_23] : memref<2x18x128xbf16, #tpu.memory_space<vmem>>, vector<2x16x128xbf16>
      %15 = vector.shape_cast %14 : vector<2x16x128xbf16> to vector<32x128xbf16>
      %c1_24 = arith.constant 1 : index
      %c0_25 = arith.constant 0 : index
      %c0_26 = arith.constant 0 : index
      %16 = vector.load %arg4[%c1_24, %c0_25, %c0_26] : memref<3x128x128xbf16, #tpu.memory_space<vmem>>, vector<1x128x128xbf16>
      %17 = vector.shape_cast %16 : vector<1x128x128xbf16> to vector<128x128xbf16>
      %cst_27 = arith.constant dense<0.000000e+00> : vector<32x128xf32>
      %18 = tpu.matmul %15, %17, %cst_27 {dimension_numbers = #tpu.dot_dimension_numbers<[1], [0], [0], [1], [0, 0, 1, 1], [], []>} : vector<32x128xbf16>, vector<128x128xbf16>, vector<32x128xf32> -> vector<32x128xf32>
      %19 = arith.addf %13, %18 : vector<32x128xf32>
      %c0_28 = arith.constant 0 : index
      %c2 = arith.constant 2 : index
      %c0_29 = arith.constant 0 : index
      %20 = vector.load %alloca[%c0_28, %c2, %c0_29] : memref<2x18x128xbf16, #tpu.memory_space<vmem>>, vector<2x16x128xbf16>
      %21 = vector.shape_cast %20 : vector<2x16x128xbf16> to vector<32x128xbf16>
      %c2_30 = arith.constant 2 : index
      %c0_31 = arith.constant 0 : index
      %c0_32 = arith.constant 0 : index
      %22 = vector.load %arg4[%c2_30, %c0_31, %c0_32] : memref<3x128x128xbf16, #tpu.memory_space<vmem>>, vector<1x128x128xbf16>
      %23 = vector.shape_cast %22 : vector<1x128x128xbf16> to vector<128x128xbf16>
      %cst_33 = arith.constant dense<0.000000e+00> : vector<32x128xf32>
      %24 = tpu.matmul %21, %23, %cst_33 {dimension_numbers = #tpu.dot_dimension_numbers<[1], [0], [0], [1], [0, 0, 1, 1], [], []>} : vector<32x128xbf16>, vector<128x128xbf16>, vector<32x128xf32> -> vector<32x128xf32>
      %25 = arith.addf %19, %24 : vector<32x128xf32>
      %c0_34 = arith.constant 0 : index
      %c0_35 = arith.constant 0 : index
      %26 = vector.load %arg5[%c0_34, %c0_35] : memref<1x8xf32, #tpu.memory_space<vmem>>, vector<1x8xf32>
      %c0_36 = arith.constant 0 : index
      %c0_37 = arith.constant 0 : index
      %27 = vector.load %arg6[%c0_36, %c0_37] : memref<1x8xf32, #tpu.memory_space<vmem>>, vector<1x8xf32>
      %cst_38 = arith.constant dense<0.000000e+00> : vector<128xf32>
      %28 = vector.multi_reduction <add>, %25, %cst_38 [0] : vector<32x128xf32> to vector<128xf32>
      %29 = vector.shape_cast %28 : vector<128xf32> to vector<1x128xf32>
      %cst_39 = arith.constant dense<0.000000e+00> : vector<1x8xf32>
      %30 = tpu.matmul %29, %0, %cst_39 {dimension_numbers = #tpu.dot_dimension_numbers<[1], [0], [0], [1], [0, 0, 1, 1], [], []>} : vector<1x128xf32>, vector<128x8xf32>, vector<1x8xf32> -> vector<1x8xf32>
      %cst_40 = arith.constant 5.120000e+02 : f32
      %31 = vector.broadcast %cst_40 : f32 to vector<1x8xf32>
      %32 = arith.divf %30, %31 : vector<1x8xf32>
      %cst_41 = arith.constant dense<0.000000e+00> : vector<1x128xf32>
      %33 = tpu.matmul %32, %1, %cst_41 {dimension_numbers = #tpu.dot_dimension_numbers<[1], [0], [0], [1], [0, 0, 1, 1], [], []>} : vector<1x8xf32>, vector<8x128xf32>, vector<1x128xf32> -> vector<1x128xf32>
      %34 = vector.broadcast %33 : vector<1x128xf32> to vector<32x128xf32>
      %35 = arith.subf %25, %34 : vector<32x128xf32>
      %36 = arith.mulf %35, %35 : vector<32x128xf32>
      %cst_42 = arith.constant dense<0.000000e+00> : vector<128xf32>
      %37 = vector.multi_reduction <add>, %36, %cst_42 [0] : vector<32x128xf32> to vector<128xf32>
      %38 = vector.shape_cast %37 : vector<128xf32> to vector<1x128xf32>
      %cst_43 = arith.constant dense<0.000000e+00> : vector<1x8xf32>
      %39 = tpu.matmul %38, %0, %cst_43 {dimension_numbers = #tpu.dot_dimension_numbers<[1], [0], [0], [1], [0, 0, 1, 1], [], []>} : vector<1x128xf32>, vector<128x8xf32>, vector<1x8xf32> -> vector<1x8xf32>
      %cst_44 = arith.constant 5.120000e+02 : f32
      %40 = vector.broadcast %cst_44 : f32 to vector<1x8xf32>
      %41 = arith.divf %39, %40 : vector<1x8xf32>
      %cst_45 = arith.constant 9.99999974E-6 : f32
      %42 = vector.broadcast %cst_45 : f32 to vector<1x8xf32>
      %43 = arith.addf %41, %42 : vector<1x8xf32>
      %44 = math.rsqrt %43 : vector<1x8xf32>
      %45 = arith.mulf %26, %44 : vector<1x8xf32>
      %cst_46 = arith.constant dense<0.000000e+00> : vector<1x128xf32>
      %46 = tpu.matmul %45, %1, %cst_46 {dimension_numbers = #tpu.dot_dimension_numbers<[1], [0], [0], [1], [0, 0, 1, 1], [], []>} : vector<1x8xf32>, vector<8x128xf32>, vector<1x128xf32> -> vector<1x128xf32>
      %47 = vector.broadcast %46 : vector<1x128xf32> to vector<32x128xf32>
      %48 = arith.mulf %35, %47 : vector<32x128xf32>
      %cst_47 = arith.constant dense<0.000000e+00> : vector<1x128xf32>
      %49 = tpu.matmul %27, %1, %cst_47 {dimension_numbers = #tpu.dot_dimension_numbers<[1], [0], [0], [1], [0, 0, 1, 1], [], []>} : vector<1x8xf32>, vector<8x128xf32>, vector<1x128xf32> -> vector<1x128xf32>
      %50 = vector.broadcast %49 : vector<1x128xf32> to vector<32x128xf32>
      %51 = arith.addf %48, %50 : vector<32x128xf32>
      %cst_48 = arith.constant 0.000000e+00 : f32
      %52 = vector.broadcast %cst_48 : f32 to vector<32x128xf32>
      %53 = arith.maximumf %51, %52 : vector<32x128xf32>
      %54 = vector.shape_cast %53 : vector<32x128xf32> to vector<2x16x128xf32>
      %cst_49 = arith.constant dense<0.000000e+00> : vector<2x128xf32>
      %55 = vector.multi_reduction <add>, %54, %cst_49 [1] : vector<2x16x128xf32> to vector<2x128xf32>
      %cst_50 = arith.constant dense<0.000000e+00> : vector<2x8xf32>
      %56 = tpu.matmul %55, %0, %cst_50 {dimension_numbers = #tpu.dot_dimension_numbers<[1], [0], [0], [1], [0, 0, 1, 1], [], []>} : vector<2x128xf32>, vector<128x8xf32>, vector<2x8xf32> -> vector<2x8xf32>
      %cst_51 = arith.constant 2.560000e+02 : f32
      %57 = vector.broadcast %cst_51 : f32 to vector<2x8xf32>
      %58 = arith.divf %56, %57 : vector<2x8xf32>
      %cst_52 = arith.constant dense<0.000000e+00> : vector<2x128xf32>
      %59 = tpu.matmul %58, %1, %cst_52 {dimension_numbers = #tpu.dot_dimension_numbers<[1], [0], [0], [1], [0, 0, 1, 1], [], []>} : vector<2x8xf32>, vector<8x128xf32>, vector<2x128xf32> -> vector<2x128xf32>
      %60 = vector.shape_cast %59 : vector<2x128xf32> to vector<2x1x128xf32>
      %61 = vector.broadcast %60 : vector<2x1x128xf32> to vector<2x16x128xf32>
      %62 = arith.addf %54, %61 : vector<2x16x128xf32>
      %c0_53 = arith.constant 0 : index
      %c0_54 = arith.constant 0 : index
      %c0_55 = arith.constant 0 : index
      %63 = vector.load %arg9[%c0_53, %c0_54, %c0_55] : memref<2x16x128xf32, #tpu.memory_space<vmem>>, vector<2x16x128xf32>
      tpu.vector_store %arg9[%c0_53, %c0_54, %c0_55], %62 {strides = array<i32>} : memref<2x16x128xf32, #tpu.memory_space<vmem>>, vector<2x16x128xf32>,
      tpu.yield
    }) : () -> ()
    return
  }
}

</mosaic_0001>

<bundles_post_ra>
// kernel: tpu_custom_call.1
= control target key start
LH: loop header
LB: loop body
LE: loop exit
PB: predicated region body
PF: predicated region fallthrough
CT: control target
= control target key end

     0   :  { %14 = vsyncpa [#allocation3], 0  ;;  %s3352_s0 = inlined_call_operand.vmem [shape: bf16[2,16,64], index: 0, kind: input, shape index: {}]   ;;  %s3353_s1 = inlined_call_operand.vmem [shape: bf16[3,64,128], index: 1, kind: input, shape index: {}]   ;;  %s3354_s2 = inlined_call_operand.vmem [shape: f32[1,8], index: 2, kind: input, shape index: {}]   ;;  %s3355_s3 = inlined_call_operand.vmem [shape: f32[1,8], index: 3, kind: input, shape index: {}]   ;;  %s3356_s4 = inlined_call_operand.hbm [shape: bf16[3,128,128], index: 4, kind: input, shape index: {}]   ;;  %s3357_s5 = inlined_call_operand.vmem [shape: f32[1,8], index: 5, kind: input, shape index: {}]   ;;  %s3358_s6 = inlined_call_operand.vmem [shape: f32[1,8], index: 6, kind: input, shape index: {}]   ;;  %s3359_s7 = inlined_call_operand.vmem [shape: f32[128,8], index: 7, kind: input, shape index: {}]   ;;  %s3360_s8 = inlined_call_operand.vmem [shape: f32[8,128], index: 8, kind: input, shape index: {}]   ;;  %s3361_s9 = inlined_call_operand.hbm [shape: f32[2,16,128], index: 9, kind: output, shape index: {}]  }
   0x1   :  { %15 = vsyncpa [#allocation4], 0  ;;  %s2762_s30 = smov [#allocation2]  }
   0x2   :  { %s29_s10 = sshll.u32 %s2762_s30, 4  ;;  %s30_s10 = int_to_ptr.vmem [resolvable:$true] %s29_s10 }
   0x3   :  { %s2726_s11 = scalar_lea.vmem %s30_s10, 3072  ;;  %p2731_p1 = scmp.lt.s32.totalorder %s30_s10, %s30_s10 }
   0x4   :  { %p2727_p0 = scmp.ne.s32.totalorder %s30_s10, %s2726_s11  ;;  %p2732_p2 = scmp.lt.s32.totalorder %s2726_s11, %s2726_s11 }
   0x6   :  { %p2733_p3 = por %p2732_p2, %p2731_p1 }
   0x8   :  { %p2734_p4 = pnand %p2733_p3, %p2727_p0 }
   0xa   :  { %2737 = shalt.err (!%p2734_p4)
}
   0xb   :  { %s2763_s12 = smov 64   ;;  %s2764_s13 = smov 4  }
   0xc   :  { %35 = dma.hbm_to_vmem [thread:$0]  %s3356_s4, 3072, %s30_s10, [#allocation3], %s2763_s12, %s2763_s12, %s2764_s13  }
   0xd   :  { %2758 = dma.done.wait [#allocation3], 3072  }
   0xe   :  { %2759 = vsyncadd [#allocation3], 4294964224  ;;  %v2829_v0 = vld [vmem:[%s3359_s7] sm:$0xff]  ;;  %v2834_v1 = vld [vmem:[%s3359_s7 + $0x8] sm:$0xff] }
   0xf   :  { %v2839_v2 = vld [vmem:[%s3359_s7 + $0x10] sm:$0xff]  ;;  %v2844_v3 = vld [vmem:[%s3359_s7 + $0x18] sm:$0xff]  ;;  %v2849_v4 = vld [vmem:[%s3359_s7 + $0x20] sm:$0xff] }
  0x10   :  { %v2854_v5 = vld [vmem:[%s3359_s7 + $0x28] sm:$0xff]  ;;  %v2859_v6 = vld [vmem:[%s3359_s7 + $0x30] sm:$0xff]  ;;  %v2864_v7 = vld [vmem:[%s3359_s7 + $0x38] sm:$0xff] }
  0x11   :  { %v2869_v8 = vld [vmem:[%s3359_s7 + $0x40] sm:$0xff]  ;;  %v2874_v9 = vld [vmem:[%s3359_s7 + $0x48] sm:$0xff]  ;;  %v2879_v10 = vld [vmem:[%s3359_s7 + $0x50] sm:$0xff] }
  0x12   :  { %v2884_v11 = vld [vmem:[%s3359_s7 + $0x58] sm:$0xff]  ;;  %v2889_v12 = vld [vmem:[%s3359_s7 + $0x60] sm:$0xff]  ;;  %v2894_v13 = vld [vmem:[%s3359_s7 + $0x68] sm:$0xff] }
  0x13   :  { %v2899_v14 = vld [vmem:[%s3359_s7 + $0x70] sm:$0xff]  ;;  %v2904_v15 = vld [vmem:[%s3359_s7 + $0x78] sm:$0xff]  ;;  %v2909_v16 = vld [vmem:[%s3360_s8] sm:$0xff] }
  0x14   :  { %v2674_v17 = vld [vmem:[%s3353_s1 + $0x38] sm:$0xff]   ;;  %v2676_v19 = vld [vmem:[%s3353_s1 + $0x30] sm:$0xff]   ;;  %v2678_v21 = vld [vmem:[%s3353_s1 + $0x28] sm:$0xff]   ;;  %vm65_vm0 = vcmask 516096   ;;  %vm128_vm1 = vcmask 519168   ;;  %vm249_vm9 = vcmask 523264  }
  0x15   :  { %v2675_v18 = vld [vmem:[%s3353_s1 + $0x18] sm:$0xff]   ;;  %2357 = vmatprep.subr.bf16.mxu0 %v2674_v17  ;;  %v2677_v20 = vld [vmem:[%s3353_s1 + $0x10] sm:$0xff]   ;;  %v2679_v22 = vld [vmem:[%s3353_s1 + $0x8] sm:$0xff]   ;;  %vm66_vm2 = vsmask.f32 256  ;;  %vm400_vm10 = vcmask 1042432  }
  0x16   :  { %2358 = vmatpush3.bf16.msra.mxu0 %v2674_v17  ;;  %2369 = vmatprep.subr.bf16.mxu1 %v2675_v18  ;;  %v2680_v23 = vld [vmem:[%s3353_s1 + $0x20] sm:$0xff]   ;;  %v71_v26 = vld [vmem:[#allocation6 + $0xc] sm:$0x1]  ;;  %vm2937_vm3 = vmand %vm65_vm0, %vm66_vm2  ;;  %vm74_vm4 = vsmask.f32 7938  ;;  %vm401_vm13 = vcmask 1046532  }
  0x17   :  { %2370 = vmatpush3.bf16.msra.mxu1 %v2675_v18  ;;  %2359 = vmatprep.subr.bf16.mxu0 %v2676_v19  ;;  %v2681_v24 = vld [vmem:[%s3353_s1] sm:$0xff]   ;;  %v76_v28 = vld [vmem:[#allocation6 + $0x8] sm:$0x1]  ;;  %v79_v29 = vld [vmem:[#allocation6 + $0x14] sm:$0x1]  ;;  %v72_v31 = vsel %vm2937_vm3, 0, %v71_v26 }
  0x18   :  { %2371 = vmatprep.subr.bf16.mxu1 %v2677_v20  ;;  %v68_v25 = vld [vmem:[#allocation6] sm:$0x1]  ;;  %vm75_vm5 = vmand %vm65_vm0, %vm74_vm4  ;;  %v83_v33 = vld [vmem:[%s3352_s0 + $0x4] sm:$0xf]  ;;  %73 = vst [vmem:[#allocation6 + $0xc] sm:$0x1] %v72_v31 }
  0x19   :  { %v69_v30 = vsel %vm2937_vm3, 0, %v68_v25  ;;  %v82_v32 = vld [vmem:[%s3352_s0] sm:$0xf]  ;;  %v77_v34 = vsel %vm75_vm5, 0, %v76_v28  ;;  %v80_v35 = vsel %vm75_vm5, 0, %v79_v29  ;;  %v97_v40 = vshrl.u32 %v83_v33, 16  ;;  %vm2971_vm8 = vmand %vm128_vm1, %vm74_vm4 }
  0x1a   :  { %2360 = vmatpush3.bf16.msra.mxu0 %v2676_v19  ;;  %70 = vst [vmem:[#allocation6] sm:$0x1] %v69_v30  ;;  %v84_v36 = vld [vmem:[%s3352_s0 + $0x8] sm:$0xf]  ;;  %v85_v37 = vld [vmem:[%s3352_s0 + $0xc] sm:$0xf]  ;;  %vm3004_vm15 = vmor %vm400_vm10, %vm401_vm13 }
  0x1b   :  { %2372 = vmatpush3.bf16.msra.mxu1 %v2677_v20  ;;  %2361 = vmatprep.subr.bf16.mxu0 %v2678_v21  ;;  %78 = vst [vmem:[#allocation6 + $0x8] sm:$0x1] %v77_v34  ;;  %81 = vst [vmem:[#allocation6 + $0x14] sm:$0x1] %v80_v35  ;;  %vm86_vm6 = vsmask.f32 4368 }
  0x1c   :  { %2373 = vmatprep.subr.bf16.mxu1 %v2679_v22  ;;  %v89_v38 = vshrl.u32 %v82_v32, 16  ;;  %v92_v39 = vshll.u32 %v82_v32, 16  ;;  %v2962_v41 = vld [vmem:[%s3353_s1 + $0x58] sm:$0xff]   ;;  %v100_v42 = vshll.u32 %v83_v33, 16  ;;  %v106_v43 = vshrl.u32 %v84_v36, 16  ;;  %vm2965_vm7 = vmor %vm66_vm2, %vm86_vm6 }
  0x1d   :  { %v109_v44 = vshll.u32 %v84_v36, 16  ;;  %v114_v45 = vshrl.u32 %v85_v37, 16  ;;  %v99_v47 = vrot.slane %v97_v40, 7  ;;  %v117_v48 = vshll.u32 %v85_v37, 16 }
  0x1e   :  { %2362 = vmatpush3.bf16.msra.mxu0 %v2678_v21  ;;  %v91_v46 = vrot.slane %v89_v38, 7  ;;  %v108_v50 = vrot.slane %v106_v43, 7  ;;  %vm159_vm11 = vsmask.f32 3328  ;;  %vm160_vm12 = vsmask.f32 7440 }
  0x1f   :  { %2374 = vmatpush3.bf16.msra.mxu1 %v2679_v22  ;;  %2363 = vmatprep.subr.bf16.mxu0 %v2680_v23  ;;  %v116_v51 = vrot.slane %v114_v45, 7  ;;  %v102_v54 = vor.u32 %v100_v42, %v99_v47  ;;  %v104_v55 = vrot.slane %v99_v47, 4  ;;  %v138_v63 = vld [vmem:[#allocation6 + $0xc] sm:$0xf]  ;;  %vm2997_vm14 = vmor %vm159_vm11, %vm160_vm12  ;;  %vm2766_vm0 = vmmov 0  }
  0x20   :  { %2375 = vmatprep.subr.bf16.mxu1 %v2681_v24  ;;  %v94_v52 = vor.u32 %v92_v39, %v91_v46  ;;  %v95_v53 = vrot.slane %v91_v46, 4  ;;  %v111_v57 = vor.u32 %v109_v44, %v108_v50  ;;  %v112_v58 = vrot.slane %v108_v50, 4 }
  0x21   :  { %v119_v59 = vor.u32 %v117_v48, %v116_v51  ;;  %v121_v60 = vrot.slane %v116_v51, 4  ;;  %v130_v62 = vld [vmem:[#allocation6] sm:$0xf] }
  0x22   :  { %2364 = vmatpush3.bf16.msra.mxu0 %v2680_v23  ;;  %v103_v61 = vsel %vm2965_vm7, %v95_v53, %v102_v54  ;;  %v131_v18 = vsel %vm2971_vm8, %v94_v52, %v130_v62  ;;  %v135_v19 = vld [vmem:[#allocation6 + $0x8] sm:$0x1]  ;;  %v139_v20 = vsel %vm2971_vm8, %v111_v57, %v138_v63  ;;  %v142_v21 = vld [vmem:[#allocation6 + $0x14] sm:$0x1] }
  0x23   :  { %2376 = vmatpush3.bf16.msra.mxu1 %v2681_v24  ;;  %2381 = vmatprep.subr.bf16.mxu0 %v2962_v41  ;;  %v120_v17 = vsel %vm2965_vm7, %v112_v58, %v119_v59  ;;  %134 = vst.msk [vmem:[#allocation6 + $0x4] sm:$0xf] %vm128_vm1, %v103_v61  ;;  %132 = vst [vmem:[#allocation6] sm:$0xf] %v131_v18  ;;  %v136_v22 = vsel %vm2937_vm3, %v104_v55, %v135_v19 }
  0x24   :  { %141 = vst.msk [vmem:[#allocation6 + $0x10] sm:$0xf] %vm128_vm1, %v120_v17  ;;  %140 = vst [vmem:[#allocation6 + $0xc] sm:$0xf] %v139_v20  ;;  %v143_v23 = vsel %vm2937_vm3, %v121_v60, %v142_v21  ;;  %vm598_vm1 = vcmask 64512  }
  0x25   :  { %137 = vst [vmem:[#allocation6 + $0x8] sm:$0x1] %v136_v22  ;;  %144 = vst [vmem:[#allocation6 + $0x14] sm:$0x1] %v143_v23 }
  0x2a   :  { %v146_v24 = vld [vmem:[#allocation6 + $0x4] sm:$0xf]  ;;  %v145_v25 = vld [vmem:[#allocation6] sm:$0xf] }
  0x2b   :  { %v172_v26 = vshll.u32 %v146_v24, 16  ;;  %v176_v28 = vshrl.u32 %v146_v24, 16  ;;  %v147_v29 = vld [vmem:[#allocation6 + $0xc] sm:$0xf]  ;;  %v163_v31 = vshrl.u32 %v145_v25, 16  ;;  %v166_v32 = vshll.u32 %v145_v25, 16 }
  0x2c   :  { %v157_v30 = vld [vmem:[#allocation6 + $0x8] sm:$0x1]  ;;  %v2137_v33 = vcombine.low %v145_v25, %v146_v24  ;;  %v2990_v34 = vld [vmem:[#allocation6 + $0x10] sm:$0xf]  ;;  %v158_v37 = vld [vmem:[#allocation6 + $0x14] sm:$0x1] }
  0x2d   :  { %v174_v35 = vrot.slane %v172_v26, 5  ;;  %v178_v27 = vrot.slane %v176_v28, 4  ;;  %v182_v36 = vshll.u32 %v157_v30, 16  ;;  %v165_v38 = vrot.slane %v163_v31, 4  ;;  %v394_v53 = vld [vmem:[#allocation6] sm:$0xe] }
  0x2e   :  { %v168_v39 = vrot.slane %v166_v32, 5  ;;  %2377 = vmatprep.mubr.msk.bf16.mxu1 %vm249_vm9, %v2137_v33  ;;  %v187_v40 = vshrl.u32 %v147_v29, 16  ;;  %v190_v42 = vshll.u32 %v147_v29, 16  ;;  %v196_v45 = vshll.u32 %v2990_v34, 16  ;;  %v2685_v31 = vld [vmem:[%s3353_s1 + $0x50] sm:$0xff]  }
  0x2f   :  { %v179_v43 = vor.u32 %v178_v27, %v174_v35  ;;  %v184_v44 = vrot.slane %v182_v36, 5  ;;  %v200_v46 = vshrl.u32 %v2990_v34, 16  ;;  %v206_v52 = vshll.u32 %v158_v37, 16  ;;  %v395_v27 = vld [vmem:[#allocation6 + $0xc] sm:$0xe] }
  0x30   :  { %v169_v48 = vor.u32 %v168_v39, %v165_v38  ;;  %v189_v50 = vrot.slane %v187_v40, 4  ;;  %v192_v51 = vrot.slane %v190_v42, 5  ;;  %v408_v55 = vrot.slane %v157_v30, 5  ;;  %v2687_v40 = vld [vmem:[%s3353_s1 + $0x40] sm:$0xff]  }
  0x31   :  { %v180_v54 = vrot.slane %v179_v43, 4  ;;  %v198_v56 = vrot.slane %v196_v45, 5  ;;  %v202_v57 = vrot.slane %v200_v46, 4  ;;  %v208_v60 = vrot.slane %v206_v52, 5 }
  0x32   :  { %v170_v58 = vrot.slane %v169_v48, 4  ;;  %v193_v59 = vor.u32 %v192_v51, %v189_v50  ;;  %v2138_v61 = vcombine.low %v147_v29, %v2990_v34  ;;  %v2145_v18 = vrot.slane %v394_v53, 9 }
  0x33   :  { %v185_v63 = vsel %vm2997_vm14, %v180_v54, %v184_v44  ;;  %v203_v17 = vor.u32 %v202_v57, %v198_v56  ;;  %v405_v19 = vrot.slane %v146_v24, 5  ;;  %v412_v33 = vrot.slane %v2990_v34, 5 }
  0x34   :  { %v175_v20 = vsel %vm2997_vm14, %v170_v58, %v174_v35  ;;  %v194_v21 = vrot.slane %v193_v59, 4  ;;  %2378 = vmatmul.mubr.msk.bf16.vlgmr.msra.gmra.mxu1 %vm249_vm9, %v2138_v61  ;;  %v2686_v35 = vld [vmem:[%s3353_s1 + $0x48] sm:$0xff]   ;;  %v415_v36 = vrot.slane %v158_v37, 5  ;;  %v2146_v38 = vrot.slane %v395_v27, 9 }
  0x35   :  { %v2129_v22 = vcombine.low %v175_v20, %v185_v63  ;;  %v204_v23 = vrot.slane %v203_v17, 4  ;;  %v406_v25 = vsel %vm3004_vm15, %v2145_v18, %v405_v19  ;;  %v407_v26 = vrot.slane %v405_v19, 4 }
  0x36   :  { %v199_v28 = vsel %vm2997_vm14, %v194_v21, %v198_v56  ;;  %v414_v39 = vrot.slane %v412_v33, 4  ;;  %v2765_v37 = vmov 0.0  }
  0x37   :  { %2365 = vmatprep.mubr.msk.bf16.mxu0 %vm249_vm9, %v2129_v22  ;;  %v209_v24 = vsel %vm2997_vm14, %v204_v23, %v208_v60  ;;  %v409_v29 = vsel %vm3004_vm15, %v407_v26, %v408_v55  ;;  %2393 = vmatprep.subr.mxu1 %v2765_v37 }
  0x38   :  { %v2130_v30 = vcombine.low %v199_v28, %v209_v24  ;;  %v2155_v32 = vcombine.low %v406_v25, %v409_v29  ;;  %v416_v34 = vsel %vm3004_vm15, %v414_v39, %v415_v36  ;;  %2394 = vmatpush3.msra.mxu1 %v2904_v15  ;;  %2425 = vmatprep.mubr.msk.f32.mxu1 %vm2766_vm0, %v2765_v37 }
  0x39   :  { %2395 = vmatprep.subr.mxu1 %v2765_v37 }
  0x3a   :  { %2366 = vmatmul.mubr.msk.bf16.vlgmr.msra.gmra.mxu0 %vm249_vm9, %v2130_v30  ;;  %2396 = vmatpush3.msra.mxu1 %v2899_v14 }
  0x3b   :  { %2382 = vmatpush3.bf16.msra.mxu0 %v2962_v41  ;;  %2389 = vmatprep.mubr.msk.bf16.mxu0 %vm249_vm9, %v2155_v32  ;;  %v413_v41 = vsel %vm3004_vm15, %v2146_v38, %v412_v33  ;;  %v672_v32 = vlaneseq }
  0x3c   :  { %2383 = vmatprep.subr.bf16.mxu0 %v2685_v31  ;;  %v2156_v42 = vcombine.low %v413_v41, %v416_v34  ;;  %2397 = vmatprep.subr.mxu1 %v2765_v37 }
  0x3d   :  { %2398 = vmatpush3.msra.mxu1 %v2894_v13  ;;  %v3118_v33 = vshrl.u32 %v672_v32, 7 }
  0x3e   :  { %2399 = vmatprep.subr.mxu1 %v2765_v37 }
  0x3f   :  { %2384 = vmatpush3.bf16.msra.mxu0 %v2685_v31  ;;  %2400 = vmatpush3.msra.mxu1 %v2889_v12 }
  0x40   :  { %2385 = vmatprep.subr.bf16.mxu0 %v2686_v35  ;;  %2401 = vmatprep.subr.mxu1 %v2765_v37 }
  0x41   :  { %2402 = vmatpush3.msra.mxu1 %v2884_v11 }
  0x42   :  { %2403 = vmatprep.subr.mxu1 %v2765_v37 }
  0x43   :  { %2386 = vmatpush3.bf16.msra.mxu0 %v2686_v35  ;;  %2404 = vmatpush3.msra.mxu1 %v2879_v10  ;;  %v3121_v35 = vsub.s32 0, %v3118_v33 }
  0x44   :  { %2387 = vmatprep.subr.bf16.mxu0 %v2687_v40  ;;  %2405 = vmatprep.subr.mxu1 %v2765_v37 }
  0x45   :  { %2406 = vmatpush3.msra.mxu1 %v2874_v9 }
  0x46   :  { %2407 = vmatprep.subr.mxu1 %v2765_v37 }
  0x47   :  { %2388 = vmatpush3.bf16.msra.mxu0 %v2687_v40  ;;  %2408 = vmatpush3.msra.mxu1 %v2869_v8 }
  0x48   :  { %2433 = vmatprep.subr.mxu0 %v2765_v37  ;;  %2409 = vmatprep.subr.mxu1 %v2765_v37 }
  0x49   :  { %2410 = vmatpush3.msra.mxu1 %v2864_v7 }
  0x4a   :  { %2390 = vmatmul.mubr.msk.bf16.vlgmr.msra.gmra.mxu0 %vm249_vm9, %v2156_v42  ;;  %2411 = vmatprep.subr.mxu1 %v2765_v37 }
  0x4b   :  { %2434 = vmatpush3.msra.mxu0 %v2904_v15  ;;  %2412 = vmatpush3.msra.mxu1 %v2859_v6 }
  0x4c   :  { %2435 = vmatprep.subr.mxu0 %v2765_v37  ;;  %2413 = vmatprep.subr.mxu1 %v2765_v37 }
  0x4d   :  { %2436 = vmatpush3.msra.mxu0 %v2899_v14  ;;  %2414 = vmatpush3.msra.mxu1 %v2854_v5 }
  0x4e   :  { %2437 = vmatprep.subr.mxu0 %v2765_v37  ;;  %2415 = vmatprep.subr.mxu1 %v2765_v37 }
  0x4f   :  { %2438 = vmatpush3.msra.mxu0 %v2894_v13  ;;  %2416 = vmatpush3.msra.mxu1 %v2849_v4 }
  0x50   :  { %2439 = vmatprep.subr.mxu0 %v2765_v37  ;;  %2417 = vmatprep.subr.mxu1 %v2765_v37 }
  0x51   :  { %2440 = vmatpush3.msra.mxu0 %v2889_v12  ;;  %2418 = vmatpush3.msra.mxu1 %v2844_v3 }
  0x52   :  { %2441 = vmatprep.subr.mxu0 %v2765_v37  ;;  %2419 = vmatprep.subr.mxu1 %v2765_v37 }
  0x53   :  { %2442 = vmatpush3.msra.mxu0 %v2884_v11  ;;  %2420 = vmatpush3.msra.mxu1 %v2839_v2 }
  0x54   :  { %2443 = vmatprep.subr.mxu0 %v2765_v37  ;;  %2421 = vmatprep.subr.mxu1 %v2765_v37 }
  0x55   :  { %2444 = vmatpush3.msra.mxu0 %v2879_v10  ;;  %2422 = vmatpush3.msra.mxu1 %v2834_v1 }
  0x56   :  { %2445 = vmatprep.subr.mxu0 %v2765_v37  ;;  %2423 = vmatprep.subr.mxu1 %v2765_v37 }
  0x57   :  { %2446 = vmatpush3.msra.mxu0 %v2874_v9  ;;  %2424 = vmatpush3.msra.mxu1 %v2829_v0 }
  0x58   :  { %2447 = vmatprep.subr.mxu0 %v2765_v37  ;;  %2428 = vmatprep.subr.mxu1 %v2765_v37 }
  0x59   :  { %2448 = vmatpush3.msra.mxu0 %v2869_v8  ;;  %2465 = vmatprep.mubr.msk.f32.mxu0 %vm2766_vm0, %v2765_v37 }
  0x5a   :  { %2449 = vmatprep.subr.mxu0 %v2765_v37 }
  0x5b   :  { %2450 = vmatpush3.msra.mxu0 %v2864_v7 }
  0x5c   :  { %2451 = vmatprep.subr.mxu0 %v2765_v37 }
  0x5d   :  { %2452 = vmatpush3.msra.mxu0 %v2859_v6 }
  0x5e   :  { %2453 = vmatprep.subr.mxu0 %v2765_v37 }
  0x5f   :  { %2454 = vmatpush3.msra.mxu0 %v2854_v5 }
  0x60   :  { %2455 = vmatprep.subr.mxu0 %v2765_v37 }
  0x61   :  { %2456 = vmatpush3.msra.mxu0 %v2849_v4 }
  0x62   :  { %2457 = vmatprep.subr.mxu0 %v2765_v37 }
  0x63   :  { %2458 = vmatpush3.msra.mxu0 %v2844_v3 }
  0x64   :  { %2459 = vmatprep.subr.mxu0 %v2765_v37 }
  0x65   :  { %2460 = vmatpush3.msra.mxu0 %v2839_v2 }
  0x66   :  { %2461 = vmatprep.subr.mxu0 %v2765_v37 }
  0x67   :  { %2462 = vmatpush3.msra.mxu0 %v2834_v1 }
  0x68   :  { %2463 = vmatprep.subr.mxu0 %v2765_v37 }
  0x69   :  { %2464 = vmatpush3.msra.mxu0 %v2829_v0 }
  0xf4   :  { %v2379_v44 = vpop.f32.mrf.mxu1 }
  0xf6   :  { %v379_v46 = vpop.f32.mrf.mxu1 }
  0xf8   :  { %v2380_v50 = vpop.f32.mrf.mxu1 }
  0xfa   :  { %v2367_v43 = vpop.f32.mrf.mxu0  ;;  %v382_v53 = vpop.f32.mrf.mxu1 }
  0xfb   :  { %v388_v59 = vadd.f32 %v2379_v44, %v2367_v43 }
  0xfc   :  { %v290_v45 = vpop.f32.mrf.mxu0 }
  0xfd   :  { %v380_v56 = vadd.f32 %v379_v46, %v290_v45 }
  0xfe   :  { %v2368_v48 = vpop.f32.mrf.mxu0 }
  0xff   :  { %v391_v63 = vadd.f32 %v2380_v50, %v2368_v48 }
 0x100   :  { %v293_v51 = vpop.f32.mrf.mxu0 }
 0x101   :  { %v383_v57 = vadd.f32 %v382_v53, %v293_v51 }
 0x10a   :  { %v2391_v52 = vpop.f32.mrf.mxu0 }
 0x10b   :  { %v513_v17 = vadd.f32 %v2391_v52, %v388_v59 }
 0x10c   :  { %v496_v54 = vpop.f32.mrf.mxu0 }
 0x10d   :  { %v511_v60 = vadd.f32 %v496_v54, %v380_v56 }
 0x10e   :  { %v2392_v55 = vpop.f32.mrf.mxu0 }
 0x10f   :  { %v514_v19 = vadd.f32 %v2392_v55, %v391_v63 }
 0x110   :  { %v499_v58 = vpop.f32.mrf.mxu0 }
 0x111   :  { %v512_v61 = vadd.f32 %v499_v58, %v383_v57 }
 0x113   :  { %v517_v18 = vadd.f32 %v512_v61, %v511_v60 }
 0x115   :  { %v518_v20 = vadd.f32 %v517_v18, %v513_v17  ;;  %v516_v18 = vld [vmem:[%s3355_s3] sm:$0x1] }
 0x117   :  { %v519_v21 = vadd.f32 %v518_v20, %v514_v19 }
 0x119   :  { %v520_v22 = vrot.slane %v519_v21, 4 }
 0x11b   :  { %v521_v23 = vadd.f32 %v520_v22, %v519_v21 }
 0x11d   :  { %v522_v25 = vrot.slane %v521_v23, 2 }
 0x11f   :  { %v523_v26 = vadd.f32 %v522_v25, %v521_v23 }
 0x121   :  { %v524_v28 = vrot.slane %v523_v26, 1 }
 0x123   :  { %v525_v24 = vadd.f32 %v524_v28, %v523_v26 }
 0x125   :  { %2426 = vmatmul.mubr.f32.vlgmr.msra.gmra.mxu1 %v525_v24 }
 0x126   :  { %2429 = vmatpush3.msra.mxu1 %v2909_v16  ;;  %2430 = vmatprep.mubr.msk.f32.mxu1 %vm2766_vm0, %v2765_v37 }
 0x127   :  { %2468 = vmatprep.subr.mxu1 %v2765_v37 }
 0x1e5   :  { %v592_v29 = vpop.f32.mrf.mxu1 }
 0x1e6   :  { %v597_v30 = vmul.f32 0.001953125, %v592_v29 }
 0x1e7   :  { %v2427_v31 = vpop.f32.mrf.mxu1 }
 0x1e8   :  { %2431 = vmatmul.mubr.msk.f32.vlgmr.msra.gmra.mxu1 %vm598_vm1, %v597_v30 }
 0x1e9   :  { %2469 = vmatpush3.msra.mxu1 %v2909_v16  ;;  %2470 = vmatprep.mubr.msk.f32.mxu1 %vm2766_vm0, %v2765_v37 }
 0x1ea   :  { %2473 = vmatprep.subr.mxu1 %v2765_v37 }
 0x2a8   :  { %v668_v27 = vpop.f32.mrf.mxu1 }
 0x2a9   :  { %v675_v36 = vrot.slane %v668_v27, %v3121_v35 }
 0x2aa   :  { %v2432_v38 = vpop.f32.mrf.mxu1 }
 0x2ab   :  { %v676_v39 = vsub.f32 %v511_v60, %v675_v36  ;;  %v677_v40 = vsub.f32 %v512_v61, %v675_v36  ;;  %v678_v41 = vsub.f32 %v513_v17, %v675_v36  ;;  %v679_v34 = vsub.f32 %v514_v19, %v675_v36  ;;  %v515_v61 = vld [vmem:[%s3354_s2] sm:$0x1] }
 0x2ad   :  { %v680_v42 = vmul.f32 %v676_v39, %v676_v39  ;;  %v681_v43 = vmul.f32 %v677_v40, %v677_v40  ;;  %v682_v44 = vmul.f32 %v678_v41, %v678_v41  ;;  %v683_v46 = vmul.f32 %v679_v34, %v679_v34 }
 0x2af   :  { %v684_v45 = vadd.f32 %v681_v43, %v680_v42 }
 0x2b1   :  { %v685_v48 = vadd.f32 %v684_v45, %v682_v44 }
 0x2b3   :  { %v686_v50 = vadd.f32 %v685_v48, %v683_v46 }
 0x2b5   :  { %v687_v51 = vrot.slane %v686_v50, 4 }
 0x2b7   :  { %v688_v52 = vadd.f32 %v687_v51, %v686_v50 }
 0x2b9   :  { %v689_v53 = vrot.slane %v688_v52, 2 }
 0x2bb   :  { %v690_v54 = vadd.f32 %v689_v53, %v688_v52 }
 0x2bd   :  { %v691_v55 = vrot.slane %v690_v54, 1 }
 0x2bf   :  { %v692_v56 = vadd.f32 %v691_v55, %v690_v54 }
 0x2c1   :  { %2466 = vmatmul.mubr.f32.vlgmr.msra.gmra.mxu0 %v692_v56 }
 0x381   :  { %v759_v57 = vpop.f32.mrf.mxu0 }
 0x382   :  { %v763_v58 = vmul.f32 0.001953125, %v759_v57 }
 0x383   :  { %v2467_v59 = vpop.f32.mrf.mxu0 }
 0x384   :  { %v764_v60 = vadd.f32 1e-05, %v763_v58 }
 0x386   :  { %2688 = vrsqrt.f32 %v764_v60 }
 0x393   :  { %v2689_v63 = vpop.eup %2688 }
 0x394   :  { %v766_v17 = vmul.f32 %v2689_v63, %v515_v61 }
 0x396   :  { %2471 = vmatmul.mubr.msk.f32.vlgmr.msra.gmra.mxu1 %vm598_vm1, %v766_v17 }
 0x397   :  { %2474 = vmatpush3.msra.mxu1 %v2909_v16  ;;  %2475 = vmatprep.mubr.msk.f32.mxu1 %vm2766_vm0, %v2765_v37 }
 0x39a   :  { %2476 = vmatmul.mubr.msk.f32.vlgmr.msra.gmra.mxu1 %vm598_vm1, %v516_v18 }
 0x456   :  { %v836_v19 = vpop.f32.mrf.mxu1 }
 0x457   :  { %v843_v20 = vrot.slane %v836_v19, %v3121_v35 }
 0x458   :  { %v2472_v21 = vpop.f32.mrf.mxu1 }
 0x459   :  { %v844_v22 = vmul.f32 %v843_v20, %v676_v39  ;;  %v845_v25 = vmul.f32 %v843_v20, %v677_v40  ;;  %v846_v26 = vmul.f32 %v843_v20, %v678_v41  ;;  %v847_v28 = vmul.f32 %v843_v20, %v679_v34 }
 0x45a   :  { %v917_v23 = vpop.f32.mrf.mxu1 }
 0x45b   :  { %v924_v24 = vrot.slane %v917_v23, %v3121_v35 }
 0x45c   :  { %v2477_v29 = vpop.f32.mrf.mxu1 }
 0x45d   :  { %v925_v30 = vadd.f32 %v924_v24, %v844_v22  ;;  %v926_v37 = vadd.f32 %v924_v24, %v845_v25  ;;  %v927_v31 = vadd.f32 %v924_v24, %v846_v26  ;;  %v928_v32 = vadd.f32 %v924_v24, %v847_v28 }
 0x45f   :  { %v929_v27 = vmax.f32 %v925_v30, 0.0  ;;  %v930_v36 = vmax.f32 %v926_v37, 0.0  ;;  %v931_v38 = vmax.f32 %v927_v31, 0.0  ;;  %v932_v42 = vmax.f32 %v928_v32, 0.0 }
 0x461   :  { %933 = vst [vmem:[#allocation5] sm:$0xff] %v929_v27  ;;  %934 = vst [vmem:[#allocation5 + $0x8] sm:$0xff] %v930_v36 }
 0x462   :  { %935 = vst [vmem:[#allocation5 + $0x10] sm:$0xff] %v931_v38  ;;  %936 = vst [vmem:[#allocation5 + $0x18] sm:$0xff] %v932_v42 }
 0x463   :  { %v2690_v39 = vld [vmem:[#allocation2 + $0x78] sm:$0xff]   ;;  %v2692_v40 = vld [vmem:[#allocation2 + $0x70] sm:$0xff]   ;;  %v2694_v34 = vld [vmem:[#allocation2 + $0x68] sm:$0xff]   ;;  %vm937_vm3 = vcmask 1040384  }
 0x464   :  { %v2691_v43 = vld [vmem:[#allocation2 + $0x38] sm:$0xff]   ;;  %2478 = vmatprep.subr.bf16.mxu1 %v2690_v39  ;;  %v2693_v41 = vld [vmem:[#allocation2 + $0x30] sm:$0xff]   ;;  %v2695_v44 = vld [vmem:[#allocation2 + $0x28] sm:$0xff]  }
 0x465   :  { %2498 = vmatprep.subr.bf16.mxu0 %v2691_v43  ;;  %2479 = vmatpush3.bf16.msra.mxu1 %v2690_v39  ;;  %v2696_v45 = vld [vmem:[#allocation2 + $0x60] sm:$0xff]   ;;  %v2698_v48 = vld [vmem:[#allocation2 + $0x58] sm:$0xff]   ;;  %v2700_v51 = vld [vmem:[#allocation2 + $0x50] sm:$0xff]  }
 0x466   :  { %2499 = vmatpush3.bf16.msra.mxu0 %v2691_v43  ;;  %2480 = vmatprep.subr.bf16.mxu1 %v2692_v40  ;;  %v2697_v46 = vld [vmem:[#allocation2 + $0x20] sm:$0xff]   ;;  %v2699_v50 = vld [vmem:[#allocation2 + $0x18] sm:$0xff]   ;;  %v2701_v52 = vld [vmem:[#allocation2 + $0x10] sm:$0xff]  }
 0x467   :  { %2500 = vmatprep.subr.bf16.mxu0 %v2693_v41  ;;  %vm3138_vm5 = vmand %vm937_vm3, %vm66_vm2  ;;  %v940_v54 = vld [vmem:[#allocation7] sm:$0x1]  ;;  %v948_v55 = vld [vmem:[#allocation7 + $0x8] sm:$0x1]  ;;  %vm1012_vm2 = vcmask 1043456  }
 0x468   :  { %v941_v56 = vsel %vm3138_vm5, 0, %v940_v54  ;;  %vm947_vm6 = vmand %vm937_vm3, %vm74_vm4  ;;  %v951_v57 = vld [vmem:[#allocation7 + $0x14] sm:$0x1]  ;;  %v954_v58 = vld [vmem:[#allocation5] sm:$0xff] }
 0x469   :  { %2481 = vmatpush3.bf16.msra.mxu1 %v2692_v40  ;;  %942 = vst [vmem:[#allocation7] sm:$0x1] %v941_v56  ;;  %v949_v59 = vsel %vm947_vm6, 0, %v948_v55  ;;  %v952_v60 = vsel %vm947_vm6, 0, %v951_v57  ;;  %v955_v61 = vld [vmem:[#allocation5 + $0x8] sm:$0xff]  ;;  %v2206_v63 = vpack.c.bf16 %v954_v58, %v954_v58  ;;  %v956_v20 = vld [vmem:[#allocation5 + $0x10] sm:$0xff]  ;;  %vm3149_vm8 = vmand %vm1012_vm2, %vm74_vm4 }
 0x46a   :  { %2501 = vmatpush3.bf16.msra.mxu0 %v2693_v41  ;;  %2482 = vmatprep.subr.bf16.mxu1 %v2694_v34  ;;  %v943_v17 = vld [vmem:[#allocation7 + $0xc] sm:$0x1]  ;;  %950 = vst [vmem:[#allocation7 + $0x8] sm:$0x1] %v949_v59  ;;  %v2207_v18 = vpack.c.bf16 %v955_v61, %v955_v61  ;;  %953 = vst [vmem:[#allocation7 + $0x14] sm:$0x1] %v952_v60  ;;  %v2208_v28 = vpack.c.bf16 %v956_v20, %v956_v20 }
 0x46b   :  { %2502 = vmatprep.subr.bf16.mxu0 %v2695_v44  ;;  %v944_v19 = vsel %vm3138_vm5, 0, %v943_v17  ;;  %v957_v21 = vld [vmem:[#allocation5 + $0x18] sm:$0xff]  ;;  %v2702_v22 = vld [vmem:[#allocation2 + $0x48] sm:$0xff]   ;;  %v973_v25 = vshrl.u32 %v2206_v63, 16  ;;  %v976_v26 = vshll.u32 %v2206_v63, 16  ;;  %v2704_v39 = vld [vmem:[#allocation2 + $0x40] sm:$0xff]  }
 0x46c   :  { %v2703_v23 = vld [vmem:[#allocation2 + $0x8] sm:$0xff]   ;;  %945 = vst [vmem:[#allocation7 + $0xc] sm:$0x1] %v944_v19  ;;  %v2209_v24 = vpack.c.bf16 %v957_v21, %v957_v21  ;;  %v981_v29 = vshrl.u32 %v2207_v18, 16  ;;  %v984_v30 = vshll.u32 %v2207_v18, 16  ;;  %v990_v31 = vshrl.u32 %v2208_v28, 16 }
 0x46d   :  { %2483 = vmatpush3.bf16.msra.mxu1 %v2694_v34  ;;  %v975_v37 = vrot.slane %v973_v25, 7  ;;  %v993_v32 = vshll.u32 %v2208_v28, 16  ;;  %v3159_v61 = vld [vmem:[#allocation2 + $0xb8] sm:$0xff]   ;;  %v2713_v47 = vld [vmem:[#allocation2 + $0x90] sm:$0xff]   ;;  %vm2768_vm4 = vmmov 0  }
 0x46e   :  { %2503 = vmatpush3.bf16.msra.mxu0 %v2695_v44  ;;  %2484 = vmatprep.subr.bf16.mxu1 %v2696_v45  ;;  %v998_v27 = vshrl.u32 %v2209_v24, 16  ;;  %v983_v36 = vrot.slane %v981_v29, 7  ;;  %v1001_v42 = vshll.u32 %v2209_v24, 16  ;;  %v992_v41 = vrot.slane %v990_v31, 7  ;;  %v2705_v44 = vld [vmem:[#allocation2] sm:$0xff]  }
 0x46f   :  { %2504 = vmatprep.subr.bf16.mxu0 %v2697_v46  ;;  %v978_v43 = vor.u32 %v976_v26, %v975_v37  ;;  %v979_v40 = vrot.slane %v975_v37, 4 }
 0x470   :  { %v1000_v34 = vrot.slane %v998_v27, 7  ;;  %v995_v54 = vor.u32 %v993_v32, %v992_v41  ;;  %v996_v55 = vrot.slane %v992_v41, 4 }
 0x471   :  { %2485 = vmatpush3.bf16.msra.mxu1 %v2696_v45  ;;  %v986_v45 = vor.u32 %v984_v30, %v983_v36  ;;  %v1025_v57 = vld [vmem:[#allocation7 + $0x14] sm:$0x1] }
 0x472   :  { %2505 = vmatpush3.bf16.msra.mxu0 %v2697_v46  ;;  %2486 = vmatprep.subr.bf16.mxu1 %v2698_v48  ;;  %v988_v46 = vrot.slane %v983_v36, 4  ;;  %v1003_v56 = vor.u32 %v1001_v42, %v1000_v34  ;;  %v1005_v59 = vrot.slane %v1000_v34, 4 }
 0x473   :  { %2506 = vmatprep.subr.bf16.mxu0 %v2699_v50  ;;  %v1021_v60 = vld [vmem:[#allocation7 + $0xc] sm:$0xf] }
 0x474   :  { %v1004_v63 = vsel %vm2965_vm7, %v996_v55, %v1003_v56  ;;  %v1022_v17 = vsel %vm3149_vm8, %v995_v54, %v1021_v60  ;;  %v1026_v18 = vsel %vm3138_vm5, %v1005_v59, %v1025_v57 }
 0x475   :  { %2487 = vmatpush3.bf16.msra.mxu1 %v2698_v48  ;;  %v1014_v48 = vld [vmem:[#allocation7] sm:$0xf]  ;;  %1023 = vst [vmem:[#allocation7 + $0xc] sm:$0xf] %v1022_v17  ;;  %1024 = vst [vmem:[#allocation7 + $0x10] sm:$0xf] %v1004_v63 }
 0x476   :  { %2507 = vmatpush3.bf16.msra.mxu0 %v2699_v50  ;;  %2488 = vmatprep.subr.bf16.mxu1 %v2700_v51  ;;  %v1015_v50 = vsel %vm3149_vm8, %v978_v43, %v1014_v48  ;;  %1027 = vst [vmem:[#allocation7 + $0x14] sm:$0x1] %v1026_v18 }
 0x477   :  { %2508 = vmatprep.subr.bf16.mxu0 %v2701_v52  ;;  %1016 = vst [vmem:[#allocation7] sm:$0xf] %v1015_v50 }
 0x479   :  { %2489 = vmatpush3.bf16.msra.mxu1 %v2700_v51  ;;  %v1018_v51 = vld [vmem:[#allocation7 + $0x8] sm:$0x1] }
 0x47a   :  { %2509 = vmatpush3.bf16.msra.mxu0 %v2701_v52  ;;  %2490 = vmatprep.subr.bf16.mxu1 %v2702_v22  ;;  %v987_v52 = vsel %vm2965_vm7, %v979_v40, %v986_v45  ;;  %v1019_v58 = vsel %vm3138_vm5, %v988_v46, %v1018_v51  ;;  %vm1915_vm7 = vcmask 1041409  }
 0x47b   :  { %2510 = vmatprep.subr.bf16.mxu0 %v2703_v23  ;;  %1017 = vst [vmem:[#allocation7 + $0x4] sm:$0xf] %v987_v52  ;;  %1020 = vst [vmem:[#allocation7 + $0x8] sm:$0x1] %v1019_v58 }
 0x47c   :  { %v1030_v28 = vld [vmem:[#allocation7 + $0xc] sm:$0xf]  ;;  %v3168_v37 = vld [vmem:[#allocation7 + $0x10] sm:$0xf] }
 0x47d   :  { %2491 = vmatpush3.bf16.msra.mxu1 %v2702_v22  ;;  %v3170_v53 = vld [vmem:[#allocation7 + $0x14] sm:$0x1]  ;;  %v1078_v27 = vshrl.u32 %v1030_v28, 16  ;;  %v1081_v38 = vshll.u32 %v1030_v28, 16  ;;  %v1087_v42 = vshll.u32 %v3168_v37, 16  ;;  %v2181_v55 = vcombine.low %v1030_v28, %v3168_v37 }
 0x47e   :  { %2511 = vmatpush3.bf16.msra.mxu0 %v2703_v23  ;;  %2492 = vmatprep.subr.bf16.mxu1 %v2704_v39  ;;  %v1028_v19 = vld [vmem:[#allocation7] sm:$0xf] }
 0x47f   :  { %2512 = vmatprep.subr.bf16.mxu0 %v2705_v44  ;;  %v1054_v22 = vshrl.u32 %v1028_v19, 16  ;;  %v1057_v49 = vshll.u32 %v1028_v19, 16  ;;  %v1332_v43 = vld [vmem:[#allocation7] sm:$0xe]  ;;  %v1080_v34 = vrot.slane %v1078_v27, 4  ;;  %v1083_v46 = vrot.slane %v1081_v38, 5 }
 0x480   :  { %v1089_v48 = vrot.slane %v1087_v42, 5  ;;  %v2190_v56 = vrot.slane %v1332_v43, 9  ;;  %v1333_v27 = vld [vmem:[#allocation7 + $0xc] sm:$0xe]  ;;  %v2715_v42 = vld [vmem:[#allocation2 + $0x80] sm:$0xff]  }
 0x481   :  { %2493 = vmatpush3.bf16.msra.mxu1 %v2704_v39  ;;  %v1056_v24 = vrot.slane %v1054_v22, 4  ;;  %v1059_v29 = vrot.slane %v1057_v49, 5  ;;  %v1091_v39 = vshrl.u32 %v3168_v37, 16  ;;  %v1084_v52 = vor.u32 %v1083_v46, %v1080_v34 }
 0x482   :  { %2513 = vmatpush3.bf16.msra.mxu0 %v2705_v44  ;;  %2518 = vmatprep.subr.bf16.mxu1 %v3159_v61  ;;  %v1029_v20 = vld [vmem:[#allocation7 + $0x4] sm:$0xf]  ;;  %v1048_v21 = vld [vmem:[#allocation7 + $0x8] sm:$0x1]  ;;  %v1097_v44 = vshll.u32 %v3170_v53, 16 }
 0x483   :  { %v1063_v23 = vshll.u32 %v1029_v20, 16  ;;  %v1067_v25 = vshrl.u32 %v1029_v20, 16  ;;  %v1073_v26 = vshll.u32 %v1048_v21, 16  ;;  %v2180_v30 = vcombine.low %v1028_v19, %v1029_v20 }
 0x484   :  { %v1060_v36 = vor.u32 %v1059_v29, %v1056_v24  ;;  %v1093_v50 = vrot.slane %v1091_v39, 4  ;;  %v1099_v54 = vrot.slane %v1097_v44, 5  ;;  %v1343_v59 = vrot.slane %v1029_v20, 5  ;;  %v2710_v24 = vld [vmem:[#allocation2 + $0xa8] sm:$0xff]   ;;  %v2711_v29 = vld [vmem:[#allocation2 + $0xa0] sm:$0xff]  }
 0x485   :  { %v1065_v31 = vrot.slane %v1063_v23, 5  ;;  %v1069_v32 = vrot.slane %v1067_v25, 4  ;;  %2514 = vmatprep.mubr.bf16.mxu0 %v2180_v30  ;;  %v1075_v41 = vrot.slane %v1073_v26, 5  ;;  %v1346_v63 = vrot.slane %v1048_v21, 5  ;;  %v2709_v26 = vld [vmem:[#allocation2 + $0xb0] sm:$0xff]   ;;  %v2712_v30 = vld [vmem:[#allocation2 + $0x98] sm:$0xff]  }
 0x486   :  { %v1061_v45 = vrot.slane %v1060_v36, 4  ;;  %v1094_v58 = vor.u32 %v1093_v50, %v1089_v48  ;;  %2515 = vmatmul.mubr.bf16.vlgmr.msra.gmra.mxu0 %v2181_v55  ;;  %v1085_v18 = vrot.slane %v1084_v52, 4  ;;  %v1344_v22 = vsel %vm3004_vm15, %v2190_v56, %v1343_v59 }
 0x487   :  { %v1070_v40 = vor.u32 %v1069_v32, %v1065_v31  ;;  %v1345_v49 = vrot.slane %v1343_v59, 4  ;;  %v2714_v32 = vld [vmem:[#allocation2 + $0x88] sm:$0xff]   ;;  %v2191_v36 = vrot.slane %v1333_v27, 9 }
 0x488   :  { %v1066_v57 = vsel %vm2997_vm14, %v1061_v45, %v1065_v31  ;;  %v1095_v19 = vrot.slane %v1094_v58, 4  ;;  %v1090_v23 = vsel %vm2997_vm14, %v1085_v18, %v1089_v48  ;;  %v1350_v31 = vrot.slane %v3168_v37, 5 }
 0x489   :  { %v1071_v51 = vrot.slane %v1070_v40, 4  ;;  %v1347_v21 = vsel %vm3004_vm15, %v1345_v49, %v1346_v63  ;;  %v2767_v37 = vmov 0.0  }
 0x48a   :  { %v1100_v25 = vsel %vm2997_vm14, %v1095_v19, %v1099_v54  ;;  %v2192_v28 = vcombine.low %v1344_v22, %v1347_v21  ;;  %v1352_v38 = vrot.slane %v1350_v31, 4  ;;  %v1351_v39 = vsel %vm3004_vm15, %v2191_v36, %v1350_v31  ;;  %2538 = vmatprep.subr.mxu0 %v2767_v37  ;;  %2570 = vmatprep.mubr.msk.f32.mxu0 %vm2768_vm4, %v2767_v37 }
 0x48b   :  { %v1076_v60 = vsel %vm2997_vm14, %v1071_v51, %v1075_v41  ;;  %v2171_v20 = vcombine.low %v1090_v23, %v1100_v25  ;;  %2539 = vmatpush3.msra.mxu0 %v2904_v15 }
 0x48c   :  { %v2170_v17 = vcombine.low %v1066_v57, %v1076_v60  ;;  %2540 = vmatprep.subr.mxu0 %v2767_v37 }
 0x48d   :  { %2541 = vmatpush3.msra.mxu0 %v2899_v14 }
 0x48e   :  { %2494 = vmatprep.mubr.bf16.mxu1 %v2170_v17  ;;  %2542 = vmatprep.subr.mxu0 %v2767_v37 }
 0x48f   :  { %2495 = vmatmul.mubr.bf16.vlgmr.msra.gmra.mxu1 %v2171_v20  ;;  %2543 = vmatpush3.msra.mxu0 %v2894_v13 }
 0x490   :  { %2519 = vmatpush3.bf16.msra.mxu1 %v3159_v61  ;;  %2534 = vmatprep.mubr.bf16.mxu1 %v2192_v28  ;;  %v1353_v61 = vrot.slane %v3170_v53, 5 }
 0x491   :  { %2520 = vmatprep.subr.bf16.mxu1 %v2709_v26  ;;  %2544 = vmatprep.subr.mxu0 %v2767_v37 }
 0x492   :  { %v1354_v43 = vsel %vm3004_vm15, %v1352_v38, %v1353_v61  ;;  %2545 = vmatpush3.msra.mxu0 %v2889_v12 }
 0x493   :  { %v2193_v40 = vcombine.low %v1351_v39, %v1354_v43  ;;  %2546 = vmatprep.subr.mxu0 %v2767_v37 }
 0x494   :  { %2521 = vmatpush3.bf16.msra.mxu1 %v2709_v26  ;;  %2547 = vmatpush3.msra.mxu0 %v2884_v11 }
 0x495   :  { %2522 = vmatprep.subr.bf16.mxu1 %v2710_v24  ;;  %2548 = vmatprep.subr.mxu0 %v2767_v37 }
 0x496   :  { %2549 = vmatpush3.msra.mxu0 %v2879_v10 }
 0x497   :  { %2550 = vmatprep.subr.mxu0 %v2767_v37 }
 0x498   :  { %2523 = vmatpush3.bf16.msra.mxu1 %v2710_v24  ;;  %2551 = vmatpush3.msra.mxu0 %v2874_v9 }
 0x499   :  { %2524 = vmatprep.subr.bf16.mxu1 %v2711_v29  ;;  %2552 = vmatprep.subr.mxu0 %v2767_v37 }
 0x49a   :  { %2553 = vmatpush3.msra.mxu0 %v2869_v8 }
 0x49b   :  { %2554 = vmatprep.subr.mxu0 %v2767_v37 }
 0x49c   :  { %2525 = vmatpush3.bf16.msra.mxu1 %v2711_v29  ;;  %2555 = vmatpush3.msra.mxu0 %v2864_v7 }
 0x49d   :  { %2526 = vmatprep.subr.bf16.mxu1 %v2712_v30  ;;  %2556 = vmatprep.subr.mxu0 %v2767_v37 }
 0x49e   :  { %2557 = vmatpush3.msra.mxu0 %v2859_v6 }
 0x49f   :  { %2558 = vmatprep.subr.mxu0 %v2767_v37 }
 0x4a0   :  { %2527 = vmatpush3.bf16.msra.mxu1 %v2712_v30  ;;  %2559 = vmatpush3.msra.mxu0 %v2854_v5 }
 0x4a1   :  { %2528 = vmatprep.subr.bf16.mxu1 %v2713_v47  ;;  %2560 = vmatprep.subr.mxu0 %v2767_v37 }
 0x4a2   :  { %2561 = vmatpush3.msra.mxu0 %v2849_v4 }
 0x4a3   :  { %2562 = vmatprep.subr.mxu0 %v2767_v37 }
 0x4a4   :  { %2529 = vmatpush3.bf16.msra.mxu1 %v2713_v47  ;;  %2563 = vmatpush3.msra.mxu0 %v2844_v3 }
 0x4a5   :  { %2530 = vmatprep.subr.bf16.mxu1 %v2714_v32  ;;  %2564 = vmatprep.subr.mxu0 %v2767_v37 }
 0x4a6   :  { %2565 = vmatpush3.msra.mxu0 %v2839_v2 }
 0x4a7   :  { %2566 = vmatprep.subr.mxu0 %v2767_v37 }
 0x4a8   :  { %2531 = vmatpush3.bf16.msra.mxu1 %v2714_v32  ;;  %2567 = vmatpush3.msra.mxu0 %v2834_v1 }
 0x4a9   :  { %2532 = vmatprep.subr.bf16.mxu1 %v2715_v42  ;;  %2568 = vmatprep.subr.mxu0 %v2767_v37 }
 0x4aa   :  { %2569 = vmatpush3.msra.mxu0 %v2829_v0 }
 0x4ab   :  { %2613 = vmatprep.subr.mxu0 %v2767_v37 }
 0x4ac   :  { %2533 = vmatpush3.bf16.msra.mxu1 %v2715_v42 }
 0x4ad   :  { %2573 = vmatprep.subr.mxu1 %v2767_v37 }
 0x4af   :  { %2535 = vmatmul.mubr.bf16.vlgmr.msra.gmra.mxu1 %v2193_v40 }
 0x4b0   :  { %2574 = vmatpush3.msra.mxu1 %v2909_v16  ;;  %2575 = vmatprep.mubr.msk.f32.mxu1 %vm2768_vm4, %v2767_v37 }
 0x4b1   :  { %2578 = vmatprep.subr.mxu1 %v2767_v37 }
 0x546   :  { %v2516_v53 = vpop.f32.mrf.mxu0 }
 0x548   :  { %v1317_v34 = vpop.f32.mrf.mxu0 }
 0x54a   :  { %v2517_v45 = vpop.f32.mrf.mxu0 }
 0x54c   :  { %v1320_v50 = vpop.f32.mrf.mxu0 }
 0x54f   :  { %v2496_v62 = vpop.f32.mrf.mxu1 }
 0x550   :  { %v1326_v52 = vadd.f32 %v2516_v53, %v2496_v62 }
 0x551   :  { %v1208_v41 = vpop.f32.mrf.mxu1 }
 0x552   :  { %v1318_v55 = vadd.f32 %v1317_v34, %v1208_v41 }
 0x553   :  { %v2497_v44 = vpop.f32.mrf.mxu1 }
 0x554   :  { %v1329_v60 = vadd.f32 %v2517_v45, %v2497_v44 }
 0x555   :  { %v1211_v46 = vpop.f32.mrf.mxu1 }
 0x556   :  { %v1321_v56 = vadd.f32 %v1320_v50, %v1211_v46 }
 0x56f   :  { %v2536_v48 = vpop.f32.mrf.mxu1 }
 0x570   :  { %v1479_v63 = vadd.f32 %v2536_v48, %v1326_v52 }
 0x571   :  { %v1462_v51 = vpop.f32.mrf.mxu1 }
 0x572   :  { %v1477_v58 = vadd.f32 %v1462_v51, %v1318_v55 }
 0x573   :  { %v2537_v54 = vpop.f32.mrf.mxu1 }
 0x574   :  { %v1480_v18 = vadd.f32 %v2537_v54, %v1329_v60 }
 0x575   :  { %v1465_v57 = vpop.f32.mrf.mxu1 }
 0x576   :  { %v1478_v59 = vadd.f32 %v1465_v57, %v1321_v56  ;;  %v1481_v56 = vld [vmem:[%s3357_s5] sm:$0x1]  ;;  %s2770_s5 = smov [#allocation5]  }
 0x578   :  { %v1483_v17 = vadd.f32 %v1478_v59, %v1477_v58 }
 0x57a   :  { %v1484_v19 = vadd.f32 %v1483_v17, %v1479_v63 }
 0x57c   :  { %v1485_v22 = vadd.f32 %v1484_v19, %v1480_v18 }
 0x57e   :  { %v1486_v49 = vrot.slane %v1485_v22, 4 }
 0x580   :  { %v1487_v23 = vadd.f32 %v1486_v49, %v1485_v22 }
 0x582   :  { %v1488_v25 = vrot.slane %v1487_v23, 2 }
 0x584   :  { %v1489_v20 = vadd.f32 %v1488_v25, %v1487_v23 }
 0x586   :  { %v1490_v26 = vrot.slane %v1489_v20, 1 }
 0x588   :  { %v1491_v21 = vadd.f32 %v1490_v26, %v1489_v20 }
 0x58a   :  { %2571 = vmatmul.mubr.f32.vlgmr.msra.gmra.mxu0 %v1491_v21 }
 0x58b   :  { %2614 = vmatpush3.msra.mxu0 %v2909_v16  ;;  %2615 = vmatprep.mubr.msk.f32.mxu0 %vm2768_vm4, %v2767_v37 }
 0x58c   :  { %2618 = vmatprep.subr.mxu0 %v2767_v37 }
 0x64a   :  { %v1558_v28 = vpop.f32.mrf.mxu0 }
 0x64b   :  { %v1563_v24 = vmul.f32 0.001953125, %v1558_v28 }
 0x64c   :  { %v2572_v29 = vpop.f32.mrf.mxu0 }
 0x64d   :  { %2576 = vmatmul.mubr.msk.f32.vlgmr.msra.gmra.mxu1 %vm598_vm1, %v1563_v24 }
 0x64e   :  { %2579 = vmatpush3.msra.mxu1 %v2904_v15  ;;  %2610 = vmatprep.mubr.msk.f32.mxu1 %vm2768_vm4, %v2767_v37 }
 0x64f   :  { %2580 = vmatprep.subr.mxu1 %v2767_v37 }
 0x650   :  { %2581 = vmatpush3.msra.mxu1 %v2899_v14 }
 0x651   :  { %2582 = vmatprep.subr.mxu1 %v2767_v37 }
 0x652   :  { %2583 = vmatpush3.msra.mxu1 %v2894_v13 }
 0x653   :  { %2584 = vmatprep.subr.mxu1 %v2767_v37 }
 0x654   :  { %2585 = vmatpush3.msra.mxu1 %v2889_v12 }
 0x655   :  { %2586 = vmatprep.subr.mxu1 %v2767_v37 }
 0x656   :  { %2587 = vmatpush3.msra.mxu1 %v2884_v11 }
 0x657   :  { %2588 = vmatprep.subr.mxu1 %v2767_v37 }
 0x658   :  { %2589 = vmatpush3.msra.mxu1 %v2879_v10 }
 0x659   :  { %2590 = vmatprep.subr.mxu1 %v2767_v37 }
 0x65a   :  { %2591 = vmatpush3.msra.mxu1 %v2874_v9 }
 0x65b   :  { %2592 = vmatprep.subr.mxu1 %v2767_v37 }
 0x65c   :  { %2593 = vmatpush3.msra.mxu1 %v2869_v8 }
 0x65d   :  { %2594 = vmatprep.subr.mxu1 %v2767_v37 }
 0x65e   :  { %2595 = vmatpush3.msra.mxu1 %v2864_v7 }
 0x65f   :  { %2596 = vmatprep.subr.mxu1 %v2767_v37 }
 0x660   :  { %2597 = vmatpush3.msra.mxu1 %v2859_v6 }
 0x661   :  { %2598 = vmatprep.subr.mxu1 %v2767_v37 }
 0x662   :  { %2599 = vmatpush3.msra.mxu1 %v2854_v5 }
 0x663   :  { %2600 = vmatprep.subr.mxu1 %v2767_v37 }
 0x664   :  { %2601 = vmatpush3.msra.mxu1 %v2849_v4 }
 0x665   :  { %2602 = vmatprep.subr.mxu1 %v2767_v37 }
 0x666   :  { %2603 = vmatpush3.msra.mxu1 %v2844_v3 }
 0x667   :  { %2604 = vmatprep.subr.mxu1 %v2767_v37 }
 0x668   :  { %2605 = vmatpush3.msra.mxu1 %v2839_v2 }
 0x669   :  { %2606 = vmatprep.subr.mxu1 %v2767_v37 }
 0x66a   :  { %2607 = vmatpush3.msra.mxu1 %v2834_v1 }
 0x66b   :  { %2608 = vmatprep.subr.mxu1 %v2767_v37 }
 0x66c   :  { %2609 = vmatpush3.msra.mxu1 %v2829_v0 }
 0x66d   :  { %2658 = vmatprep.subr.mxu1 %v2767_v37 }
 0x70d   :  { %v1634_v30 = vpop.f32.mrf.mxu1 }
 0x70e   :  { %v1641_v47 = vrot.slane %v1634_v30, %v3121_v35 }
 0x70f   :  { %v2577_v31 = vpop.f32.mrf.mxu1 }
 0x710   :  { %v3275_v32 = vsub.f32 %v1477_v58, %v1641_v47  ;;  %v3277_v27 = vsub.f32 %v1478_v59, %v1641_v47  ;;  %v3279_v61 = vsub.f32 %v1479_v63, %v1641_v47  ;;  %v3281_v36 = vsub.f32 %v1480_v18, %v1641_v47  ;;  %v1482_v58 = vld [vmem:[%s3358_s6] sm:$0x1]  ;;  %s2109_s6 = sshll.u32 %s2770_s5, 4  ;;  %s2110_s6 = int_to_ptr.vmem [resolvable:$true] %s2109_s6 }
 0x711   :  { %v2769_v31 = vmov 1966171168   ;;  %s2738_s16 = scalar_lea.vmem %s2110_s6, 512  ;;  %p2743_p6 = scmp.lt.s32.totalorder %s2110_s6, %s2110_s6 }
 0x712   :  { %v1646_v38 = vmul.f32 %v3275_v32, %v3275_v32  ;;  %v1647_v42 = vmul.f32 %v3277_v27, %v3277_v27  ;;  %v1648_v39 = vmul.f32 %v3279_v61, %v3279_v61  ;;  %v1649_v40 = vmul.f32 %v3281_v36, %v3281_v36  ;;  %p2739_p5 = scmp.ne.s32.totalorder %s2110_s6, %s2738_s16  ;;  %p2744_p7 = scmp.lt.s32.totalorder %s2738_s16, %s2738_s16 }
 0x714   :  { %v1650_v43 = vadd.f32 %v1647_v42, %v1646_v38  ;;  %p2745_p8 = por %p2744_p7, %p2743_p6 }
 0x716   :  { %v1651_v62 = vadd.f32 %v1650_v43, %v1648_v39  ;;  %p2746_p9 = pnand %p2745_p8, %p2739_p5 }
 0x718   :  { %v1652_v53 = vadd.f32 %v1651_v62, %v1649_v40 }
 0x71a   :  { %v1653_v41 = vrot.slane %v1652_v53, 4 }
 0x71c   :  { %v1654_v34 = vadd.f32 %v1653_v41, %v1652_v53 }
 0x71e   :  { %v1655_v44 = vrot.slane %v1654_v34, 2 }
 0x720   :  { %v1656_v45 = vadd.f32 %v1655_v44, %v1654_v34 }
 0x722   :  { %v1657_v46 = vrot.slane %v1656_v45, 1 }
 0x724   :  { %v1658_v48 = vadd.f32 %v1657_v46, %v1656_v45 }
 0x726   :  { %2611 = vmatmul.mubr.f32.vlgmr.msra.gmra.mxu1 %v1658_v48 }
 0x727   :  { %2659 = vmatpush3.msra.mxu1 %v2909_v16  ;;  %2660 = vmatprep.mubr.msk.f32.mxu1 %vm2768_vm4, %v2767_v37 }
 0x7e6   :  { %v1725_v50 = vpop.f32.mrf.mxu1 }
 0x7e7   :  { %v1729_v51 = vmul.f32 0.001953125, %v1725_v50 }
 0x7e8   :  { %v2612_v54 = vpop.f32.mrf.mxu1 }
 0x7e9   :  { %v1730_v55 = vadd.f32 1e-05, %v1729_v51 }
 0x7eb   :  { %2716 = vrsqrt.f32 %v1730_v55 }
 0x7f8   :  { %v2717_v57 = vpop.eup %2716 }
 0x7f9   :  { %v1732_v52 = vmul.f32 %v2717_v57, %v1481_v56 }
 0x7fb   :  { %2616 = vmatmul.mubr.msk.f32.vlgmr.msra.gmra.mxu0 %vm598_vm1, %v1732_v52 }
 0x7fc   :  { %2619 = vmatpush3.msra.mxu0 %v2909_v16  ;;  %2620 = vmatprep.mubr.msk.f32.mxu0 %vm2768_vm4, %v2767_v37 }
 0x7fd   :  { %2623 = vmatprep.subr.mxu0 %v2767_v37 }
 0x7ff   :  { %2621 = vmatmul.mubr.msk.f32.vlgmr.msra.gmra.mxu0 %vm598_vm1, %v1482_v58 }
 0x800   :  { %2624 = vmatpush3.msra.mxu0 %v2904_v15  ;;  %2655 = vmatprep.mubr.msk.f32.mxu0 %vm2768_vm4, %v2767_v37 }
 0x801   :  { %2625 = vmatprep.subr.mxu0 %v2767_v37 }
 0x802   :  { %2626 = vmatpush3.msra.mxu0 %v2899_v14 }
 0x803   :  { %2627 = vmatprep.subr.mxu0 %v2767_v37 }
 0x804   :  { %2628 = vmatpush3.msra.mxu0 %v2894_v13 }
 0x805   :  { %2629 = vmatprep.subr.mxu0 %v2767_v37 }
 0x806   :  { %2630 = vmatpush3.msra.mxu0 %v2889_v12 }
 0x807   :  { %2631 = vmatprep.subr.mxu0 %v2767_v37 }
 0x808   :  { %2632 = vmatpush3.msra.mxu0 %v2884_v11 }
 0x809   :  { %2633 = vmatprep.subr.mxu0 %v2767_v37 }
 0x80a   :  { %2634 = vmatpush3.msra.mxu0 %v2879_v10 }
 0x80b   :  { %2635 = vmatprep.subr.mxu0 %v2767_v37 }
 0x80c   :  { %2636 = vmatpush3.msra.mxu0 %v2874_v9 }
 0x80d   :  { %2637 = vmatprep.subr.mxu0 %v2767_v37 }
 0x80e   :  { %2638 = vmatpush3.msra.mxu0 %v2869_v8 }
 0x80f   :  { %2639 = vmatprep.subr.mxu0 %v2767_v37 }
 0x810   :  { %2640 = vmatpush3.msra.mxu0 %v2864_v7 }
 0x811   :  { %2641 = vmatprep.subr.mxu0 %v2767_v37 }
 0x812   :  { %2642 = vmatpush3.msra.mxu0 %v2859_v6 }
 0x813   :  { %2643 = vmatprep.subr.mxu0 %v2767_v37 }
 0x814   :  { %2644 = vmatpush3.msra.mxu0 %v2854_v5 }
 0x815   :  { %2645 = vmatprep.subr.mxu0 %v2767_v37 }
 0x816   :  { %2646 = vmatpush3.msra.mxu0 %v2849_v4 }
 0x817   :  { %2647 = vmatprep.subr.mxu0 %v2767_v37 }
 0x818   :  { %2648 = vmatpush3.msra.mxu0 %v2844_v3 }
 0x819   :  { %2649 = vmatprep.subr.mxu0 %v2767_v37 }
 0x81a   :  { %2650 = vmatpush3.msra.mxu0 %v2839_v2 }
 0x81b   :  { %2651 = vmatprep.subr.mxu0 %v2767_v37 }
 0x81c   :  { %2652 = vmatpush3.msra.mxu0 %v2834_v1 }
 0x81d   :  { %2653 = vmatprep.subr.mxu0 %v2767_v37 }
 0x81e   :  { %2654 = vmatpush3.msra.mxu0 %v2829_v0 }
 0x8bb   :  { %v1802_v5 = vpop.f32.mrf.mxu0 }
 0x8bc   :  { %v1809_v6 = vrot.slane %v1802_v5, %v3121_v35 }
 0x8bd   :  { %v2617_v4 = vpop.f32.mrf.mxu0 }
 0x8be   :  { %v1810_v7 = vmul.f32 %v1809_v6, %v3275_v32  ;;  %v1811_v3 = vmul.f32 %v1809_v6, %v3277_v27  ;;  %v1812_v9 = vmul.f32 %v1809_v6, %v3279_v61  ;;  %v1813_v2 = vmul.f32 %v1809_v6, %v3281_v36 }
 0x8bf   :  { %v1883_v8 = vpop.f32.mrf.mxu0  ;;  %v2065_v32 = vunpack.c.l.s4 %v2769_v31 }
 0x8c0   :  { %v1890_v10 = vrot.slane %v1883_v8, %v3121_v35 }
 0x8c1   :  { %v2622_v1 = vpop.f32.mrf.mxu0  ;;  %v2066_v27 = vunpack.c.0.s8 %v2065_v32 }
 0x8c2   :  { %v1891_v11 = vadd.f32 %v1890_v10, %v1810_v7  ;;  %v1892_v12 = vadd.f32 %v1890_v10, %v1811_v3  ;;  %v1893_v13 = vadd.f32 %v1890_v10, %v1812_v9  ;;  %v1894_v0 = vadd.f32 %v1890_v10, %v1813_v2 }
 0x8c3   :  { %v2069_v61 = vsub.s32 %v2066_v27, %v3118_v33 }
 0x8c4   :  { %v1895_v14 = vmax.f32 %v1891_v11, 0.0  ;;  %v1896_v15 = vmax.f32 %v1892_v12, 0.0  ;;  %v1897_v16 = vmax.f32 %v1893_v13, 0.0  ;;  %v1898_v37 = vmax.f32 %v1894_v0, 0.0 }
 0x8c6   :  { %v1899_v59 = vadd.f32 %v1896_v15, %v1895_v14  ;;  %v1906_v60 = vadd.f32 %v1898_v37, %v1897_v16 }
 0x8c8   :  { %v1900_v63 = vrot.slane %v1899_v59, 4  ;;  %v1907_v17 = vrot.slane %v1906_v60, 4 }
 0x8ca   :  { %v1901_v18 = vadd.f32 %v1900_v63, %v1899_v59  ;;  %v1908_v19 = vadd.f32 %v1907_v17, %v1906_v60 }
 0x8cc   :  { %v1902_v22 = vrot.slane %v1901_v18, 2  ;;  %v1909_v49 = vrot.slane %v1908_v19, 2 }
 0x8ce   :  { %v1903_v23 = vadd.f32 %v1902_v22, %v1901_v18  ;;  %v1910_v25 = vadd.f32 %v1909_v49, %v1908_v19 }
 0x8d0   :  { %v1904_v20 = vrot.slane %v1903_v23, 1  ;;  %v1911_v26 = vrot.slane %v1910_v25, 1 }
 0x8d2   :  { %v1905_v21 = vadd.f32 %v1904_v20, %v1903_v23  ;;  %v1912_v28 = vadd.f32 %v1911_v26, %v1910_v25 }
 0x8d4   :  { %v1916_v24 = vsel %vm1915_vm7, %v1912_v28, %v1905_v21 }
 0x8d5   :  { %2656 = vmatmul.mubr.f32.vlgmr.msra.gmra.mxu0 %v1916_v24 }
 0x995   :  { %v1984_v29 = vpop.f32.mrf.mxu0 }
 0x996   :  { %v1989_v30 = vmul.f32 0.00390625, %v1984_v29 }
 0x997   :  { %v2657_v47 = vpop.f32.mrf.mxu0 }
 0x998   :  { %2661 = vmatmul.mubr.msk.f32.vlgmr.msra.gmra.mxu1 %vm598_vm1, %v1989_v30 }
 0xa58   :  { %v2059_v36 = vpop.f32.mrf.mxu1 }
 0xa59   :  { %v2070_v38 = vrot.slane %v2059_v36, %v2069_v61 }
 0xa5a   :  { %v2662_v42 = vpop.f32.mrf.mxu1 }
 0xa5b   :  { %v2071_v39 = vcombine.high %v2070_v38, %v2070_v38  ;;  %v2078_v43 = vrot.slane %v2070_v38, %v2069_v61 }
 0xa5d   :  { %v2085_v40 = vrot.slane %v2071_v39, %v2069_v61  ;;  %v2089_v62 = vrot.slane %v2078_v43, %v3121_v35 }
 0xa5f   :  { %v2093_v53 = vrot.slane %v2085_v40, %v3121_v35  ;;  %v2096_v41 = vadd.f32 %v2089_v62, %v1895_v14  ;;  %v2097_v34 = vadd.f32 %v2089_v62, %v1896_v15 }
 0xa61   :  { %v2098_v44 = vadd.f32 %v2093_v53, %v1897_v16  ;;  %v2099_v45 = vadd.f32 %v2093_v53, %v1898_v37  ;;  %2100 = vst [vmem:[#allocation5] sm:$0xff] %v2096_v41  ;;  %2101 = vst [vmem:[#allocation5 + $0x8] sm:$0xff] %v2097_v34 }
 0xa63   :  { %2102 = vst [vmem:[#allocation5 + $0x10] sm:$0xff] %v2098_v44  ;;  %2103 = vst [vmem:[#allocation5 + $0x18] sm:$0xff] %v2099_v45 }
 0xa64   :  { %2749 = shalt.err (!%p2746_p9)
}
 0xa65   :  { %s2771_s17 = smov 128   ;;  %s2772_s18 = smov 8  }
 0xa66   :  { %2115 = dma.vmem_to_hbm [thread:$0]  %s2110_s6, 512, %s3361_s9, [#allocation4], %s2771_s17, %s2771_s17, %s2772_s18  }
 0xa67   :  { %2760 = dma.done.wait [#allocation4], 512  }
 0xa68   :  { %2761 = vsyncadd [#allocation4], 4294966784 }
 0xa69   :  { %2119 = vsyncpa [#allocation3], 1 }
 0xa6a   :  { %2120 = vsyncpa [#allocation4], 1 }

</bundles_post_ra>
